<compile_context>
chip_gen: v7x
topology: tpu7x:2x2x1
jax: 0.10.0
libtpu: 0.0.40
codegen_flags: <defaults>
</compile_context>

<pallas_src>
import math

import jax
import jax.numpy as jnp
from jax.experimental import pallas as pl
from jax.experimental.pallas import tpu as pltpu

# ------------------------------- configuration -------------------------------
B, S = 2, 8          # batch, sequence length
H = 128              # hidden size
NH, HD = 2, 64       # attention heads, head dim
FFN = 256            # feed-forward intermediate size
N_LAYERS = 2         # encoder layers
VOCAB = 64
MAX_POS = 16
N_CLASSES = 4
C_PAD = 128          # lane-dense padded classifier width
LN_EPS = 1e-12
NEG_INF = -1e9
BS = B * S

# rows of the packed per-layer vector slab, shape (8, 3H) f32
_R_BQKV, _R_BO, _R_G1, _R_BE1, _R_B1, _R_B2, _R_G2, _R_BE2 = range(8)
# rows of the packed head-side vector slab, shape (8, 128) f32
_R_EMB_G, _R_EMB_B, _R_BP, _R_BC = range(4)


# ------------------------------ kernel helpers -------------------------------
def _layernorm(x, gamma, beta):
    # f32 statistics throughout (LN_EPS=1e-12 underflows in bf16)
    mu = jnp.mean(x, axis=-1, keepdims=True)
    var = jnp.mean((x - mu) ** 2, axis=-1, keepdims=True)
    return (x - mu) * jax.lax.rsqrt(var + LN_EPS) * gamma + beta


def _gelu(x):
    # TODO(synk): DistilBERT uses exact erf-GELU; tanh approximation used here
    # (EUP-friendly and guaranteed to lower on Mosaic).
    return jax.nn.gelu(x, approximate=True)


# ------------------ fused forward kernel (grid = (B, layers)) ----------------
def fused_forward_kernel(
        emb_ref, bias_ref, head_ref,
        wqkv_ref, wo_ref, w1_ref, w2_ref, vec_ref,
        wp_ref, wc_ref,
        out_ref, x_vmem):
    layer = pl.program_id(1)

    # --- layer 0: embedding LayerNorm into the resident activation slab -----
    @pl.when(layer == 0)
    def _():
        x_vmem[...] = _layernorm(emb_ref[...],
                                 head_ref[_R_EMB_G:_R_EMB_G + 1, :],
                                 head_ref[_R_EMB_B:_R_EMB_B + 1, :])

    x = x_vmem[...]                                # (S, H) f32, resident
    x_bf = x.astype(jnp.bfloat16)
    bias_row = bias_ref[0]                         # (1, S) additive key mask

    vecs = vec_ref[0]                              # (8, 3H) packed layer vectors
    bqkv = vecs[_R_BQKV:_R_BQKV + 1, :]
    bo = vecs[_R_BO:_R_BO + 1, :H]
    g1 = vecs[_R_G1:_R_G1 + 1, :H]
    be1 = vecs[_R_BE1:_R_BE1 + 1, :H]
    b1 = vecs[_R_B1:_R_B1 + 1, :FFN]
    b2 = vecs[_R_B2:_R_B2 + 1, :H]
    g2 = vecs[_R_G2:_R_G2 + 1, :H]
    be2 = vecs[_R_BE2:_R_BE2 + 1, :H]

    # --- fused QKV projection (softmax scale folded into Q cols of Wqkv) ----
    qkv = (jnp.dot(x_bf, wqkv_ref[0], preferred_element_type=jnp.float32)
           + bqkv)                                 # (S, 3H) f32

    # --- attention: per head, accumulate straight into the Wo product -------
    wo_full = wo_ref[0]                            # (H, H) bf16
    attn = None
    for h in range(NH):                            # NH=2, statically unrolled
        lo = h * HD
        qh = qkv[:, lo:lo + HD].astype(jnp.bfloat16)
        kh = qkv[:, H + lo:H + lo + HD].astype(jnp.bfloat16)
        vh = qkv[:, 2 * H + lo:2 * H + lo + HD].astype(jnp.bfloat16)
        s = jax.lax.dot_general(qh, kh, (((1,), (1,)), ((), ())),
                                preferred_element_type=jnp.float32)  # (S, S)
        s = s + bias_row                           # broadcast over query rows
        m = jnp.max(s, axis=-1, keepdims=True)
        e = jnp.exp(s - m)
        p = e * pl.reciprocal(jnp.sum(e, axis=-1, keepdims=True), approx=True)
        ctx = jnp.dot(p.astype(jnp.bfloat16), vh,
                      preferred_element_type=jnp.float32)            # (S, HD)
        part = jnp.dot(ctx.astype(jnp.bfloat16), wo_full[lo:lo + HD, :],
                       preferred_element_type=jnp.float32)           # (S, H)
        attn = part if attn is None else attn + part
    attn = attn + bo

    # --- residual + LayerNorm 1 ----------------------------------------------
    h1 = _layernorm(x + attn, g1, be1)

    # --- feed-forward ----------------------------------------------------------
    f = jnp.dot(h1.astype(jnp.bfloat16), w1_ref[0],
                preferred_element_type=jnp.float32) + b1
    f = _gelu(f)
    f = jnp.dot(f.astype(jnp.bfloat16), w2_ref[0],
                preferred_element_type=jnp.float32) + b2

    # --- residual + LayerNorm 2, write back the resident activation ---------
    x_new = _layernorm(h1 + f, g2, be2)
    x_vmem[...] = x_new

    # --- last layer: CLS row -> pre_classifier(tanh) -> classifier ----------
    @pl.when(layer == pl.num_programs(1) - 1)
    def _():
        pooled = x_new[0:1, :]                     # CLS token = row 0 of slab
        hcls = jnp.tanh(jnp.dot(pooled.astype(jnp.bfloat16), wp_ref[...],
                                preferred_element_type=jnp.float32)
                        + head_ref[_R_BP:_R_BP + 1, :])
        # dropout(p=0.1) is identity in eval mode; logits stored lane-dense
        logits = (jnp.dot(hcls.astype(jnp.bfloat16), wc_ref[...],
                          preferred_element_type=jnp.float32)
                  + head_ref[_R_BC:_R_BC + 1, :])
        out_ref[...] = logits.reshape(out_ref.shape)


# ------------------------------ parameters -----------------------------------
def init_params(key):
    keys = iter(jax.random.split(key, 16))

    def nrm(shape, scale=0.02):
        return (scale * jax.random.normal(next(keys), shape)).astype(jnp.float32)

    inv_sqrt_hd = 1.0 / math.sqrt(HD)

    def make_wqkv():
        w = nrm((H, 3 * H))
        # fold the 1/sqrt(HD) softmax scale into the Q output columns
        return w.at[:, :H].multiply(inv_sqrt_hd)

    wqkv = jnp.stack([make_wqkv() for _ in range(N_LAYERS)]).astype(jnp.bfloat16)
    wo = jnp.stack([nrm((H, H)) for _ in range(N_LAYERS)]).astype(jnp.bfloat16)
    w1 = jnp.stack([nrm((H, FFN)) for _ in range(N_LAYERS)]).astype(jnp.bfloat16)
    w2 = jnp.stack([nrm((FFN, H)) for _ in range(N_LAYERS)]).astype(jnp.bfloat16)

    # packed per-layer bias / LN-affine slab (ONE pipelined DMA per layer):
    #   row 0: bqkv (3H, Q part pre-scaled)    row 4: b1 (FFN)
    #   row 1: bo (H)      row 2: g1 (H)       row 5: b2 (H)   row 6: g2 (H)
    #   row 3: be1 (H)                         row 7: be2 (H)
    vec = jnp.zeros((8, 3 * H), jnp.float32)
    vec = vec.at[_R_G1, :H].set(1.0).at[_R_G2, :H].set(1.0)
    vec = vec.at[_R_BQKV, :H].multiply(inv_sqrt_hd)  # keep Q bias consistent
    vec_slab = jnp.stack([vec for _ in range(N_LAYERS)])

    # packed resident head-side slab: emb LN gamma/beta, bp, bc (padded)
    head_vec = jnp.zeros((8, C_PAD), jnp.float32).at[_R_EMB_G, :H].set(1.0)

    return {
        'word_emb': nrm((VOCAB, H)),
        'pos_emb': nrm((MAX_POS, H)),
        'wqkv': wqkv, 'wo': wo, 'w1': w1, 'w2': w2,
        'vec_slab': vec_slab,
        'head_vec': head_vec,
        'wp': nrm((H, H)).astype(jnp.bfloat16),
        'wc_pad': jnp.pad(nrm((H, N_CLASSES)),
                          ((0, 0), (0, C_PAD - N_CLASSES))).astype(jnp.bfloat16),
    }


# ------------------------------ forward pass ----------------------------------
def forward(params, input_ids, attention_mask, token_type_ids):
    # token_type_ids accepted but unused -- DistilBERT has no segment
    # embeddings, matching the PyTorch module's forward.
    del token_type_ids

    # embedding gather is plain-JAX glue; everything downstream is one kernel
    word = jnp.take(params['word_emb'], input_ids, axis=0)            # (B,S,H)
    pos = params['pos_emb'][:S][None, :, :]                           # (1,S,H)
    emb = (word + pos).reshape(BS, H).astype(jnp.float32)

    # additive key-mask bias kept at (B,1,S); broadcast happens in-kernel
    mask_bias = ((1.0 - attention_mask.astype(jnp.float32))
                 * NEG_INF).reshape(B, 1, S)

    args = (emb, mask_bias, params['head_vec'],
            params['wqkv'], params['wo'], params['w1'], params['w2'],
            params['vec_slab'], params['wp'], params['wc_pad'])

    in_specs = [
        pl.BlockSpec((S, H), lambda b, l: (b, 0)),             # per-batch emb
        pl.BlockSpec((1, 1, S), lambda b, l: (b, 0, 0)),       # per-batch mask
        pl.BlockSpec((8, C_PAD), lambda b, l: (0, 0)),         # head vec slab
        pl.BlockSpec((1, H, 3 * H), lambda b, l: (l, 0, 0)),   # wqkv
        pl.BlockSpec((1, H, H), lambda b, l: (l, 0, 0)),       # wo
        pl.BlockSpec((1, H, FFN), lambda b, l: (l, 0, 0)),     # w1
        pl.BlockSpec((1, FFN, H), lambda b, l: (l, 0, 0)),     # w2
        pl.BlockSpec((1, 8, 3 * H), lambda b, l: (l, 0, 0)),   # packed vectors
        pl.BlockSpec((H, H), lambda b, l: (0, 0)),             # wp
        pl.BlockSpec((H, C_PAD), lambda b, l: (0, 0)),         # wc (padded)
    ]

    logits_pad = pl.pallas_call(
        fused_forward_kernel,
        out_shape=jax.ShapeDtypeStruct((B, 1, C_PAD), jnp.float32),
        grid_spec=pltpu.PrefetchScalarGridSpec(
            num_scalar_prefetch=0,
            grid=(B, N_LAYERS),
            in_specs=in_specs,
            out_specs=pl.BlockSpec((1, 1, C_PAD), lambda b, l: (b, 0, 0)),
            scratch_shapes=[pltpu.VMEM((S, H), jnp.float32)],
        ),
        compiler_params=pltpu.CompilerParams(
            # batch axis may split across TensorCores (v7x); layers sequential
            dimension_semantics=("parallel", "arbitrary"),
            # toy shapes need <2 MiB; at real DistilBERT scale this must be
            # budgeted explicitly against each chip's VMEM (esp. v5e / v7x).
            vmem_limit_bytes=32 * 1024 * 1024,
        ),
    )(*args)

    return logits_pad.reshape(B, C_PAD)[:, :N_CLASSES]


# ----------------------------------- main -------------------------------------
if __name__ == "__main__":
    key = jax.random.PRNGKey(0)
    k_param, k_ids = jax.random.split(key)

    params = init_params(k_param)
    input_ids = jax.random.randint(k_ids, (B, S), 0, VOCAB, dtype=jnp.int32)
    attention_mask = jnp.ones((B, S), jnp.int32).at[1, S - 1].set(0)
    token_type_ids = jnp.zeros((B, S), jnp.int32)

    logits = jax.jit(forward)(params, input_ids, attention_mask, token_type_ids)
    jax.block_until_ready(logits)
    assert logits.shape == (B, N_CLASSES)
    assert bool(jnp.all(jnp.isfinite(logits)))
    print("KERNEL_OK")
</pallas_src>

<mosaic_0001>
module attributes {stable_mosaic.version = 11 : i64} {
  func.func @fused_forward_kernel(%arg0: i32, %arg1: i32, %arg2: memref<8x128xf32, #tpu.memory_space<vmem>>, %arg3: memref<1x1x8xf32, #tpu.memory_space<vmem>>, %arg4: memref<8x128xf32, #tpu.memory_space<vmem>>, %arg5: memref<1x128x384xbf16, #tpu.memory_space<vmem>>, %arg6: memref<1x128x128xbf16, #tpu.memory_space<vmem>>, %arg7: memref<1x128x256xbf16, #tpu.memory_space<vmem>>, %arg8: memref<1x256x128xbf16, #tpu.memory_space<vmem>>, %arg9: memref<1x8x384xf32, #tpu.memory_space<vmem>>, %arg10: memref<128x128xbf16, #tpu.memory_space<vmem>>, %arg11: memref<128x128xbf16, #tpu.memory_space<vmem>>, %arg12: memref<1x1x128xf32, #tpu.memory_space<vmem>>, %arg13: memref<8x128xf32, #tpu.memory_space<vmem>>) attributes {dimension_semantics = [#tpu.dimension_semantics<parallel>, #tpu.dimension_semantics<arbitrary>], iteration_bounds = array<i64: 2, 2>, scalar_prefetch = 0 : i64, scratch_operands = 1 : i64, tpu.core_type = #tpu.core_type<tc>, window_params = [{transform_indices = @transform_0, window_bounds = array<i64: 8, 128>}, {transform_indices = @transform_1, window_bounds = array<i64: 1, 1, 8>}, {pipeline_mode = #tpu.pipeline_mode<synchronous>, transform_indices = @transform_2, window_bounds = array<i64: 8, 128>}, {transform_indices = @transform_3, window_bounds = array<i64: 1, 128, 384>}, {transform_indices = @transform_4, window_bounds = array<i64: 1, 128, 128>}, {transform_indices = @transform_5, window_bounds = array<i64: 1, 128, 256>}, {transform_indices = @transform_6, window_bounds = array<i64: 1, 256, 128>}, {transform_indices = @transform_7, window_bounds = array<i64: 1, 8, 384>}, {pipeline_mode = #tpu.pipeline_mode<synchronous>, transform_indices = @transform_8, window_bounds = array<i64: 128, 128>}, {pipeline_mode = #tpu.pipeline_mode<synchronous>, transform_indices = @transform_9, window_bounds = array<i64: 128, 128>}, {transform_indices = @transform_10, window_bounds = array<i64: 1, 1, 128>}]} {
    %c0_i32 = arith.constant 0 : i32
    %0 = arith.cmpi eq, %arg1, %c0_i32 : i32
    %1 = arith.extui %0 : i1 to i32
    %c0_i32_0 = arith.constant 0 : i32
    %2 = arith.cmpi ne, %1, %c0_i32_0 : i32
    scf.if %2 {
      %c0_49 = arith.constant 0 : index
      %c0_50 = arith.constant 0 : index
      %150 = vector.load %arg2[%c0_49, %c0_50] : memref<8x128xf32, #tpu.memory_space<vmem>>, vector<8x128xf32>
      %c0_51 = arith.constant 0 : index
      %c0_52 = arith.constant 0 : index
      %151 = vector.load %arg4[%c0_51, %c0_52] : memref<8x128xf32, #tpu.memory_space<vmem>>, vector<1x128xf32>
      %c1 = arith.constant 1 : index
      %c0_53 = arith.constant 0 : index
      %152 = vector.load %arg4[%c1, %c0_53] : memref<8x128xf32, #tpu.memory_space<vmem>>, vector<1x128xf32>
      %cst_54 = arith.constant dense<0.000000e+00> : vector<8xf32>
      %153 = vector.multi_reduction <add>, %150, %cst_54 [1] : vector<8x128xf32> to vector<8xf32>
      %154 = vector.shape_cast %153 : vector<8xf32> to vector<8x1xf32>
      %cst_55 = arith.constant 1.280000e+02 : f32
      %155 = vector.broadcast %cst_55 : f32 to vector<8x1xf32>
      %156 = arith.divf %154, %155 : vector<8x1xf32>
      %157 = vector.broadcast %156 : vector<8x1xf32> to vector<8x128xf32>
      %158 = arith.subf %150, %157 : vector<8x128xf32>
      %159 = arith.mulf %158, %158 : vector<8x128xf32>
      %cst_56 = arith.constant dense<0.000000e+00> : vector<8xf32>
      %160 = vector.multi_reduction <add>, %159, %cst_56 [1] : vector<8x128xf32> to vector<8xf32>
      %161 = vector.shape_cast %160 : vector<8xf32> to vector<8x1xf32>
      %cst_57 = arith.constant 1.280000e+02 : f32
      %162 = vector.broadcast %cst_57 : f32 to vector<8x1xf32>
      %163 = arith.divf %161, %162 : vector<8x1xf32>
      %164 = vector.broadcast %156 : vector<8x1xf32> to vector<8x128xf32>
      %165 = arith.subf %150, %164 : vector<8x128xf32>
      %cst_58 = arith.constant 9.99999996E-13 : f32
      %166 = vector.broadcast %cst_58 : f32 to vector<8x1xf32>
      %167 = arith.addf %163, %166 : vector<8x1xf32>
      %168 = math.rsqrt %167 : vector<8x1xf32>
      %169 = vector.broadcast %168 : vector<8x1xf32> to vector<8x128xf32>
      %170 = arith.mulf %165, %169 : vector<8x128xf32>
      %171 = vector.broadcast %151 : vector<1x128xf32> to vector<8x128xf32>
      %172 = arith.mulf %170, %171 : vector<8x128xf32>
      %173 = vector.broadcast %152 : vector<1x128xf32> to vector<8x128xf32>
      %174 = arith.addf %172, %173 : vector<8x128xf32>
      %c0_59 = arith.constant 0 : index
      %c0_60 = arith.constant 0 : index
      %175 = vector.load %arg13[%c0_59, %c0_60] : memref<8x128xf32, #tpu.memory_space<vmem>>, vector<8x128xf32>
      tpu.vector_store %arg13[%c0_59, %c0_60], %174 {strides = array<i32>} : memref<8x128xf32, #tpu.memory_space<vmem>>, vector<8x128xf32>,
    } else {
    }
    %c0 = arith.constant 0 : index
    %c0_1 = arith.constant 0 : index
    %3 = vector.load %arg13[%c0, %c0_1] : memref<8x128xf32, #tpu.memory_space<vmem>>, vector<8x128xf32>
    %4 = arith.truncf %3 : vector<8x128xf32> to vector<8x128xbf16>
    %c0_2 = arith.constant 0 : index
    %c0_3 = arith.constant 0 : index
    %c0_4 = arith.constant 0 : index
    %5 = vector.load %arg3[%c0_2, %c0_3, %c0_4] : memref<1x1x8xf32, #tpu.memory_space<vmem>>, vector<1x1x8xf32>
    %6 = vector.shape_cast %5 : vector<1x1x8xf32> to vector<1x8xf32>
    %c0_5 = arith.constant 0 : index
    %c0_6 = arith.constant 0 : index
    %c0_7 = arith.constant 0 : index
    %7 = vector.load %arg9[%c0_5, %c0_6, %c0_7] : memref<1x8x384xf32, #tpu.memory_space<vmem>>, vector<1x8x384xf32>
    %8 = vector.shape_cast %7 : vector<1x8x384xf32> to vector<8x384xf32>
    %9 = vector.extract_strided_slice %8 {offsets = [0, 0], sizes = [1, 384], strides = [1, 1]} : vector<8x384xf32> to vector<1x384xf32>
    %10 = vector.extract_strided_slice %8 {offsets = [1, 0], sizes = [1, 128], strides = [1, 1]} : vector<8x384xf32> to vector<1x128xf32>
    %11 = vector.extract_strided_slice %8 {offsets = [2, 0], sizes = [1, 128], strides = [1, 1]} : vector<8x384xf32> to vector<1x128xf32>
    %12 = vector.extract_strided_slice %8 {offsets = [3, 0], sizes = [1, 128], strides = [1, 1]} : vector<8x384xf32> to vector<1x128xf32>
    %13 = vector.extract_strided_slice %8 {offsets = [4, 0], sizes = [1, 256], strides = [1, 1]} : vector<8x384xf32> to vector<1x256xf32>
    %14 = vector.extract_strided_slice %8 {offsets = [5, 0], sizes = [1, 128], strides = [1, 1]} : vector<8x384xf32> to vector<1x128xf32>
    %15 = vector.extract_strided_slice %8 {offsets = [6, 0], sizes = [1, 128], strides = [1, 1]} : vector<8x384xf32> to vector<1x128xf32>
    %16 = vector.extract_strided_slice %8 {offsets = [7, 0], sizes = [1, 128], strides = [1, 1]} : vector<8x384xf32> to vector<1x128xf32>
    %c0_8 = arith.constant 0 : index
    %c0_9 = arith.constant 0 : index
    %c0_10 = arith.constant 0 : index
    %17 = vector.load %arg5[%c0_8, %c0_9, %c0_10] : memref<1x128x384xbf16, #tpu.memory_space<vmem>>, vector<1x128x384xbf16>
    %18 = vector.shape_cast %17 : vector<1x128x384xbf16> to vector<128x384xbf16>
    %cst = arith.constant dense<0.000000e+00> : vector<8x384xf32>
    %19 = tpu.matmul %4, %18, %cst {dimension_numbers = #tpu.dot_dimension_numbers<[1], [0], [0], [1], [0, 0, 1, 1], [], []>} : vector<8x128xbf16>, vector<128x384xbf16>, vector<8x384xf32> -> vector<8x384xf32>
    %20 = vector.broadcast %9 : vector<1x384xf32> to vector<8x384xf32>
    %21 = arith.addf %19, %20 : vector<8x384xf32>
    %c0_11 = arith.constant 0 : index
    %c0_12 = arith.constant 0 : index
    %c0_13 = arith.constant 0 : index
    %22 = vector.load %arg6[%c0_11, %c0_12, %c0_13] : memref<1x128x128xbf16, #tpu.memory_space<vmem>>, vector<1x128x128xbf16>
    %23 = vector.shape_cast %22 : vector<1x128x128xbf16> to vector<128x128xbf16>
    %24 = vector.extract_strided_slice %21 {offsets = [0, 0], sizes = [8, 64], strides = [1, 1]} : vector<8x384xf32> to vector<8x64xf32>
    %25 = arith.truncf %24 : vector<8x64xf32> to vector<8x64xbf16>
    %26 = vector.extract_strided_slice %21 {offsets = [0, 128], sizes = [8, 64], strides = [1, 1]} : vector<8x384xf32> to vector<8x64xf32>
    %27 = arith.truncf %26 : vector<8x64xf32> to vector<8x64xbf16>
    %28 = vector.extract_strided_slice %21 {offsets = [0, 256], sizes = [8, 64], strides = [1, 1]} : vector<8x384xf32> to vector<8x64xf32>
    %29 = arith.truncf %28 : vector<8x64xf32> to vector<8x64xbf16>
    %cst_14 = arith.constant dense<0.000000e+00> : vector<8x8xf32>
    %30 = tpu.matmul %25, %27, %cst_14 {dimension_numbers = #tpu.dot_dimension_numbers<[1], [1], [0], [0], [0, 0, 1, 0], [], []>} : vector<8x64xbf16>, vector<8x64xbf16>, vector<8x8xf32> -> vector<8x8xf32>
    %31 = vector.broadcast %6 : vector<1x8xf32> to vector<8x8xf32>
    %32 = arith.addf %30, %31 : vector<8x8xf32>
    %cst_15 = arith.constant dense<0xFF800000> : vector<8xf32>
    %33 = vector.multi_reduction <maximumf>, %32, %cst_15 [1] : vector<8x8xf32> to vector<8xf32>
    %34 = vector.shape_cast %33 : vector<8xf32> to vector<8x1xf32>
    %35 = vector.broadcast %34 : vector<8x1xf32> to vector<8x8xf32>
    %36 = arith.subf %32, %35 : vector<8x8xf32>
    %37 = math.exp %36 : vector<8x8xf32>
    %cst_16 = arith.constant dense<0.000000e+00> : vector<8xf32>
    %38 = vector.multi_reduction <add>, %37, %cst_16 [1] : vector<8x8xf32> to vector<8xf32>
    %39 = vector.shape_cast %38 : vector<8xf32> to vector<8x1xf32>
    %40 = tpu.reciprocal %39 {approx = true} : vector<8x1xf32> -> vector<8x1xf32>
    %41 = vector.broadcast %40 : vector<8x1xf32> to vector<8x8xf32>
    %42 = arith.mulf %37, %41 : vector<8x8xf32>
    %43 = arith.truncf %42 : vector<8x8xf32> to vector<8x8xbf16>
    %cst_17 = arith.constant dense<0.000000e+00> : vector<8x64xf32>
    %44 = tpu.matmul %43, %29, %cst_17 {dimension_numbers = #tpu.dot_dimension_numbers<[1], [0], [0], [1], [0, 0, 1, 1], [], []>} : vector<8x8xbf16>, vector<8x64xbf16>, vector<8x64xf32> -> vector<8x64xf32>
    %45 = arith.truncf %44 : vector<8x64xf32> to vector<8x64xbf16>
    %46 = vector.extract_strided_slice %23 {offsets = [0, 0], sizes = [64, 128], strides = [1, 1]} : vector<128x128xbf16> to vector<64x128xbf16>
    %cst_18 = arith.constant dense<0.000000e+00> : vector<8x128xf32>
    %47 = tpu.matmul %45, %46, %cst_18 {dimension_numbers = #tpu.dot_dimension_numbers<[1], [0], [0], [1], [0, 0, 1, 1], [], []>} : vector<8x64xbf16>, vector<64x128xbf16>, vector<8x128xf32> -> vector<8x128xf32>
    %48 = vector.extract_strided_slice %21 {offsets = [0, 64], sizes = [8, 64], strides = [1, 1]} : vector<8x384xf32> to vector<8x64xf32>
    %49 = arith.truncf %48 : vector<8x64xf32> to vector<8x64xbf16>
    %50 = vector.extract_strided_slice %21 {offsets = [0, 192], sizes = [8, 64], strides = [1, 1]} : vector<8x384xf32> to vector<8x64xf32>
    %51 = arith.truncf %50 : vector<8x64xf32> to vector<8x64xbf16>
    %52 = vector.extract_strided_slice %21 {offsets = [0, 320], sizes = [8, 64], strides = [1, 1]} : vector<8x384xf32> to vector<8x64xf32>
    %53 = arith.truncf %52 : vector<8x64xf32> to vector<8x64xbf16>
    %cst_19 = arith.constant dense<0.000000e+00> : vector<8x8xf32>
    %54 = tpu.matmul %49, %51, %cst_19 {dimension_numbers = #tpu.dot_dimension_numbers<[1], [1], [0], [0], [0, 0, 1, 0], [], []>} : vector<8x64xbf16>, vector<8x64xbf16>, vector<8x8xf32> -> vector<8x8xf32>
    %55 = vector.broadcast %6 : vector<1x8xf32> to vector<8x8xf32>
    %56 = arith.addf %54, %55 : vector<8x8xf32>
    %cst_20 = arith.constant dense<0xFF800000> : vector<8xf32>
    %57 = vector.multi_reduction <maximumf>, %56, %cst_20 [1] : vector<8x8xf32> to vector<8xf32>
    %58 = vector.shape_cast %57 : vector<8xf32> to vector<8x1xf32>
    %59 = vector.broadcast %58 : vector<8x1xf32> to vector<8x8xf32>
    %60 = arith.subf %56, %59 : vector<8x8xf32>
    %61 = math.exp %60 : vector<8x8xf32>
    %cst_21 = arith.constant dense<0.000000e+00> : vector<8xf32>
    %62 = vector.multi_reduction <add>, %61, %cst_21 [1] : vector<8x8xf32> to vector<8xf32>
    %63 = vector.shape_cast %62 : vector<8xf32> to vector<8x1xf32>
    %64 = tpu.reciprocal %63 {approx = true} : vector<8x1xf32> -> vector<8x1xf32>
    %65 = vector.broadcast %64 : vector<8x1xf32> to vector<8x8xf32>
    %66 = arith.mulf %61, %65 : vector<8x8xf32>
    %67 = arith.truncf %66 : vector<8x8xf32> to vector<8x8xbf16>
    %cst_22 = arith.constant dense<0.000000e+00> : vector<8x64xf32>
    %68 = tpu.matmul %67, %53, %cst_22 {dimension_numbers = #tpu.dot_dimension_numbers<[1], [0], [0], [1], [0, 0, 1, 1], [], []>} : vector<8x8xbf16>, vector<8x64xbf16>, vector<8x64xf32> -> vector<8x64xf32>
    %69 = arith.truncf %68 : vector<8x64xf32> to vector<8x64xbf16>
    %70 = vector.extract_strided_slice %23 {offsets = [64, 0], sizes = [64, 128], strides = [1, 1]} : vector<128x128xbf16> to vector<64x128xbf16>
    %cst_23 = arith.constant dense<0.000000e+00> : vector<8x128xf32>
    %71 = tpu.matmul %69, %70, %cst_23 {dimension_numbers = #tpu.dot_dimension_numbers<[1], [0], [0], [1], [0, 0, 1, 1], [], []>} : vector<8x64xbf16>, vector<64x128xbf16>, vector<8x128xf32> -> vector<8x128xf32>
    %72 = arith.addf %47, %71 : vector<8x128xf32>
    %73 = vector.broadcast %10 : vector<1x128xf32> to vector<8x128xf32>
    %74 = arith.addf %72, %73 : vector<8x128xf32>
    %75 = arith.addf %3, %74 : vector<8x128xf32>
    %cst_24 = arith.constant dense<0.000000e+00> : vector<8xf32>
    %76 = vector.multi_reduction <add>, %75, %cst_24 [1] : vector<8x128xf32> to vector<8xf32>
    %77 = vector.shape_cast %76 : vector<8xf32> to vector<8x1xf32>
    %cst_25 = arith.constant 1.280000e+02 : f32
    %78 = vector.broadcast %cst_25 : f32 to vector<8x1xf32>
    %79 = arith.divf %77, %78 : vector<8x1xf32>
    %80 = vector.broadcast %79 : vector<8x1xf32> to vector<8x128xf32>
    %81 = arith.subf %75, %80 : vector<8x128xf32>
    %82 = arith.mulf %81, %81 : vector<8x128xf32>
    %cst_26 = arith.constant dense<0.000000e+00> : vector<8xf32>
    %83 = vector.multi_reduction <add>, %82, %cst_26 [1] : vector<8x128xf32> to vector<8xf32>
    %84 = vector.shape_cast %83 : vector<8xf32> to vector<8x1xf32>
    %cst_27 = arith.constant 1.280000e+02 : f32
    %85 = vector.broadcast %cst_27 : f32 to vector<8x1xf32>
    %86 = arith.divf %84, %85 : vector<8x1xf32>
    %87 = vector.broadcast %79 : vector<8x1xf32> to vector<8x128xf32>
    %88 = arith.subf %75, %87 : vector<8x128xf32>
    %cst_28 = arith.constant 9.99999996E-13 : f32
    %89 = vector.broadcast %cst_28 : f32 to vector<8x1xf32>
    %90 = arith.addf %86, %89 : vector<8x1xf32>
    %91 = math.rsqrt %90 : vector<8x1xf32>
    %92 = vector.broadcast %91 : vector<8x1xf32> to vector<8x128xf32>
    %93 = arith.mulf %88, %92 : vector<8x128xf32>
    %94 = vector.broadcast %11 : vector<1x128xf32> to vector<8x128xf32>
    %95 = arith.mulf %93, %94 : vector<8x128xf32>
    %96 = vector.broadcast %12 : vector<1x128xf32> to vector<8x128xf32>
    %97 = arith.addf %95, %96 : vector<8x128xf32>
    %98 = arith.truncf %97 : vector<8x128xf32> to vector<8x128xbf16>
    %c0_29 = arith.constant 0 : index
    %c0_30 = arith.constant 0 : index
    %c0_31 = arith.constant 0 : index
    %99 = vector.load %arg7[%c0_29, %c0_30, %c0_31] : memref<1x128x256xbf16, #tpu.memory_space<vmem>>, vector<1x128x256xbf16>
    %100 = vector.shape_cast %99 : vector<1x128x256xbf16> to vector<128x256xbf16>
    %cst_32 = arith.constant dense<0.000000e+00> : vector<8x256xf32>
    %101 = tpu.matmul %98, %100, %cst_32 {dimension_numbers = #tpu.dot_dimension_numbers<[1], [0], [0], [1], [0, 0, 1, 1], [], []>} : vector<8x128xbf16>, vector<128x256xbf16>, vector<8x256xf32> -> vector<8x256xf32>
    %102 = vector.broadcast %13 : vector<1x256xf32> to vector<8x256xf32>
    %103 = arith.addf %101, %102 : vector<8x256xf32>
    %104 = arith.mulf %103, %103 : vector<8x256xf32>
    %105 = arith.mulf %103, %104 : vector<8x256xf32>
    %cst_33 = arith.constant 4.471500e-02 : f32
    %106 = vector.broadcast %cst_33 : f32 to vector<8x256xf32>
    %107 = arith.mulf %106, %105 : vector<8x256xf32>
    %108 = arith.addf %103, %107 : vector<8x256xf32>
    %cst_34 = arith.constant 0.797884583 : f32
    %109 = vector.broadcast %cst_34 : f32 to vector<8x256xf32>
    %110 = arith.mulf %109, %108 : vector<8x256xf32>
    %111 = math.tanh %110 : vector<8x256xf32>
    %cst_35 = arith.constant 1.000000e+00 : f32
    %112 = vector.broadcast %cst_35 : f32 to vector<8x256xf32>
    %113 = arith.addf %112, %111 : vector<8x256xf32>
    %cst_36 = arith.constant 5.000000e-01 : f32
    %114 = vector.broadcast %cst_36 : f32 to vector<8x256xf32>
    %115 = arith.mulf %114, %113 : vector<8x256xf32>
    %116 = arith.mulf %103, %115 : vector<8x256xf32>
    %117 = arith.truncf %116 : vector<8x256xf32> to vector<8x256xbf16>
    %c0_37 = arith.constant 0 : index
    %c0_38 = arith.constant 0 : index
    %c0_39 = arith.constant 0 : index
    %118 = vector.load %arg8[%c0_37, %c0_38, %c0_39] : memref<1x256x128xbf16, #tpu.memory_space<vmem>>, vector<1x256x128xbf16>
    %119 = vector.shape_cast %118 : vector<1x256x128xbf16> to vector<256x128xbf16>
    %cst_40 = arith.constant dense<0.000000e+00> : vector<8x128xf32>
    %120 = tpu.matmul %117, %119, %cst_40 {dimension_numbers = #tpu.dot_dimension_numbers<[1], [0], [0], [1], [0, 0, 1, 1], [], []>} : vector<8x256xbf16>, vector<256x128xbf16>, vector<8x128xf32> -> vector<8x128xf32>
    %121 = vector.broadcast %14 : vector<1x128xf32> to vector<8x128xf32>
    %122 = arith.addf %120, %121 : vector<8x128xf32>
    %123 = arith.addf %97, %122 : vector<8x128xf32>
    %cst_41 = arith.constant dense<0.000000e+00> : vector<8xf32>
    %124 = vector.multi_reduction <add>, %123, %cst_41 [1] : vector<8x128xf32> to vector<8xf32>
    %125 = vector.shape_cast %124 : vector<8xf32> to vector<8x1xf32>
    %cst_42 = arith.constant 1.280000e+02 : f32
    %126 = vector.broadcast %cst_42 : f32 to vector<8x1xf32>
    %127 = arith.divf %125, %126 : vector<8x1xf32>
    %128 = vector.broadcast %127 : vector<8x1xf32> to vector<8x128xf32>
    %129 = arith.subf %123, %128 : vector<8x128xf32>
    %130 = arith.mulf %129, %129 : vector<8x128xf32>
    %cst_43 = arith.constant dense<0.000000e+00> : vector<8xf32>
    %131 = vector.multi_reduction <add>, %130, %cst_43 [1] : vector<8x128xf32> to vector<8xf32>
    %132 = vector.shape_cast %131 : vector<8xf32> to vector<8x1xf32>
    %cst_44 = arith.constant 1.280000e+02 : f32
    %133 = vector.broadcast %cst_44 : f32 to vector<8x1xf32>
    %134 = arith.divf %132, %133 : vector<8x1xf32>
    %135 = vector.broadcast %127 : vector<8x1xf32> to vector<8x128xf32>
    %136 = arith.subf %123, %135 : vector<8x128xf32>
    %cst_45 = arith.constant 9.99999996E-13 : f32
    %137 = vector.broadcast %cst_45 : f32 to vector<8x1xf32>
    %138 = arith.addf %134, %137 : vector<8x1xf32>
    %139 = math.rsqrt %138 : vector<8x1xf32>
    %140 = vector.broadcast %139 : vector<8x1xf32> to vector<8x128xf32>
    %141 = arith.mulf %136, %140 : vector<8x128xf32>
    %142 = vector.broadcast %15 : vector<1x128xf32> to vector<8x128xf32>
    %143 = arith.mulf %141, %142 : vector<8x128xf32>
    %144 = vector.broadcast %16 : vector<1x128xf32> to vector<8x128xf32>
    %145 = arith.addf %143, %144 : vector<8x128xf32>
    %c0_46 = arith.constant 0 : index
    %c0_47 = arith.constant 0 : index
    %146 = vector.load %arg13[%c0_46, %c0_47] : memref<8x128xf32, #tpu.memory_space<vmem>>, vector<8x128xf32>
    tpu.vector_store %arg13[%c0_46, %c0_47], %145 {strides = array<i32>} : memref<8x128xf32, #tpu.memory_space<vmem>>, vector<8x128xf32>,
    %c1_i32 = arith.constant 1 : i32
    %147 = arith.cmpi eq, %arg1, %c1_i32 : i32
    %148 = arith.extui %147 : i1 to i32
    %c0_i32_48 = arith.constant 0 : i32
    %149 = arith.cmpi ne, %148, %c0_i32_48 : i32
    scf.if %149 {
      %150 = vector.extract_strided_slice %145 {offsets = [0, 0], sizes = [1, 128], strides = [1, 1]} : vector<8x128xf32> to vector<1x128xf32>
      %151 = arith.truncf %150 : vector<1x128xf32> to vector<1x128xbf16>
      %c0_49 = arith.constant 0 : index
      %c0_50 = arith.constant 0 : index
      %152 = vector.load %arg10[%c0_49, %c0_50] : memref<128x128xbf16, #tpu.memory_space<vmem>>, vector<128x128xbf16>
      %cst_51 = arith.constant dense<0.000000e+00> : vector<1x128xf32>
      %153 = tpu.matmul %151, %152, %cst_51 {dimension_numbers = #tpu.dot_dimension_numbers<[1], [0], [0], [1], [0, 0, 1, 1], [], []>} : vector<1x128xbf16>, vector<128x128xbf16>, vector<1x128xf32> -> vector<1x128xf32>
      %c2 = arith.constant 2 : index
      %c0_52 = arith.constant 0 : index
      %154 = vector.load %arg4[%c2, %c0_52] : memref<8x128xf32, #tpu.memory_space<vmem>>, vector<1x128xf32>
      %155 = arith.addf %153, %154 : vector<1x128xf32>
      %156 = math.tanh %155 : vector<1x128xf32>
      %157 = arith.truncf %156 : vector<1x128xf32> to vector<1x128xbf16>
      %c0_53 = arith.constant 0 : index
      %c0_54 = arith.constant 0 : index
      %158 = vector.load %arg11[%c0_53, %c0_54] : memref<128x128xbf16, #tpu.memory_space<vmem>>, vector<128x128xbf16>
      %cst_55 = arith.constant dense<0.000000e+00> : vector<1x128xf32>
      %159 = tpu.matmul %157, %158, %cst_55 {dimension_numbers = #tpu.dot_dimension_numbers<[1], [0], [0], [1], [0, 0, 1, 1], [], []>} : vector<1x128xbf16>, vector<128x128xbf16>, vector<1x128xf32> -> vector<1x128xf32>
      %c3 = arith.constant 3 : index
      %c0_56 = arith.constant 0 : index
      %160 = vector.load %arg4[%c3, %c0_56] : memref<8x128xf32, #tpu.memory_space<vmem>>, vector<1x128xf32>
      %161 = arith.addf %159, %160 : vector<1x128xf32>
      %162 = vector.shape_cast %161 : vector<1x128xf32> to vector<1x1x128xf32>
      %c0_57 = arith.constant 0 : index
      %c0_58 = arith.constant 0 : index
      %c0_59 = arith.constant 0 : index
      %163 = vector.load %arg12[%c0_57, %c0_58, %c0_59] : memref<1x1x128xf32, #tpu.memory_space<vmem>>, vector<1x1x128xf32>
      tpu.vector_store %arg12[%c0_57, %c0_58, %c0_59], %162 {strides = array<i32>} : memref<1x1x128xf32, #tpu.memory_space<vmem>>, vector<1x1x128xf32>,
    } else {
    }
    return
  }
  func.func @transform_0(%arg0: i32, %arg1: i32) -> (i32, i32) {
    %c0_i32 = arith.constant 0 : i32
    %c0_i32_0 = arith.constant 0 : i32
    return %arg0, %c0_i32 : i32, i32
  }
  func.func @transform_1(%arg0: i32, %arg1: i32) -> (i32, i32, i32) {
    %c0_i32 = arith.constant 0 : i32
    %c0_i32_0 = arith.constant 0 : i32
    %c0_i32_1 = arith.constant 0 : i32
    return %arg0, %c0_i32, %c0_i32_0 : i32, i32, i32
  }
  func.func @transform_2(%arg0: i32, %arg1: i32) -> (i32, i32) {
    %c0_i32 = arith.constant 0 : i32
    %c0_i32_0 = arith.constant 0 : i32
    %c0_i32_1 = arith.constant 0 : i32
    return %c0_i32, %c0_i32_0 : i32, i32
  }
  func.func @transform_3(%arg0: i32, %arg1: i32) -> (i32, i32, i32) {
    %c0_i32 = arith.constant 0 : i32
    %c0_i32_0 = arith.constant 0 : i32
    %c0_i32_1 = arith.constant 0 : i32
    return %arg1, %c0_i32, %c0_i32_0 : i32, i32, i32
  }
  func.func @transform_4(%arg0: i32, %arg1: i32) -> (i32, i32, i32) {
    %c0_i32 = arith.constant 0 : i32
    %c0_i32_0 = arith.constant 0 : i32
    %c0_i32_1 = arith.constant 0 : i32
    return %arg1, %c0_i32, %c0_i32_0 : i32, i32, i32
  }
  func.func @transform_5(%arg0: i32, %arg1: i32) -> (i32, i32, i32) {
    %c0_i32 = arith.constant 0 : i32
    %c0_i32_0 = arith.constant 0 : i32
    %c0_i32_1 = arith.constant 0 : i32
    return %arg1, %c0_i32, %c0_i32_0 : i32, i32, i32
  }
  func.func @transform_6(%arg0: i32, %arg1: i32) -> (i32, i32, i32) {
    %c0_i32 = arith.constant 0 : i32
    %c0_i32_0 = arith.constant 0 : i32
    %c0_i32_1 = arith.constant 0 : i32
    return %arg1, %c0_i32, %c0_i32_0 : i32, i32, i32
  }
  func.func @transform_7(%arg0: i32, %arg1: i32) -> (i32, i32, i32) {
    %c0_i32 = arith.constant 0 : i32
    %c0_i32_0 = arith.constant 0 : i32
    %c0_i32_1 = arith.constant 0 : i32
    return %arg1, %c0_i32, %c0_i32_0 : i32, i32, i32
  }
  func.func @transform_8(%arg0: i32, %arg1: i32) -> (i32, i32) {
    %c0_i32 = arith.constant 0 : i32
    %c0_i32_0 = arith.constant 0 : i32
    %c0_i32_1 = arith.constant 0 : i32
    return %c0_i32, %c0_i32_0 : i32, i32
  }
  func.func @transform_9(%arg0: i32, %arg1: i32) -> (i32, i32) {
    %c0_i32 = arith.constant 0 : i32
    %c0_i32_0 = arith.constant 0 : i32
    %c0_i32_1 = arith.constant 0 : i32
    return %c0_i32, %c0_i32_0 : i32, i32
  }
  func.func @transform_10(%arg0: i32, %arg1: i32) -> (i32, i32, i32) {
    %c0_i32 = arith.constant 0 : i32
    %c0_i32_0 = arith.constant 0 : i32
    %c0_i32_1 = arith.constant 0 : i32
    return %arg0, %c0_i32, %c0_i32_0 : i32, i32, i32
  }
}

</mosaic_0001>

<bundles_post_ra>
// kernel: forward.1
= control target key start
LH: loop header
LB: loop body
LE: loop exit
PB: predicated region body
PF: predicated region fallthrough
CT: control target
= control target key end

     0   :  { %s3468_s0 = inlined_call_operand.vmem [shape: f32[16,128], index: 0, kind: input, shape index: {}]   ;;  %s3469_s1 = inlined_call_operand.vmem [shape: f32[2,1,8], index: 1, kind: input, shape index: {}]   ;;  %s3470_s2 = inlined_call_operand.vmem [shape: f32[8,128], index: 2, kind: input, shape index: {}]   ;;  %s3471_s3 = inlined_call_operand.hbm [shape: bf16[2,128,384], index: 3, kind: input, shape index: {}]   ;;  %s3472_s4 = inlined_call_operand.vmem [shape: bf16[2,128,128], index: 4, kind: input, shape index: {}]   ;;  %s3473_s5 = inlined_call_operand.hbm [shape: bf16[2,128,256], index: 5, kind: input, shape index: {}]   ;;  %s3474_s6 = inlined_call_operand.hbm [shape: bf16[2,256,128], index: 6, kind: input, shape index: {}]   ;;  %s3475_s7 = inlined_call_operand.vmem [shape: f32[2,8,384], index: 7, kind: input, shape index: {}]   ;;  %s3476_s8 = inlined_call_operand.vmem [shape: bf16[128,128], index: 8, kind: input, shape index: {}]   ;;  %s3477_s9 = inlined_call_operand.hbm [shape: bf16[128,128], index: 9, kind: input, shape index: {}]   ;;  %s3478_s10 = inlined_call_operand.hbm [shape: f32[2,1,128], index: 10, kind: output, shape index: {}]  }
   0x1   :  { %3503 = sst [smem:[#allocation27_spill]] %s3468_s0 }
   0x2   :  { %3504 = sst [smem:[#allocation28_spill]] %s3469_s1 }
   0x3   :  { %3505 = sst [smem:[#allocation29_spill]] %s3470_s2 }
   0x4   :  { %3506 = sst [smem:[#allocation30_spill]] %s3471_s3 }
   0x5   :  { %3507 = sst [smem:[#allocation31_spill]] %s3472_s4 }
   0x6   :  { %3508 = sst [smem:[#allocation32_spill]] %s3473_s5 }
   0x7   :  { %3509 = sst [smem:[#allocation33_spill]] %s3474_s6 }
   0x8   :  { %3510 = sst [smem:[#allocation34_spill]] %s3475_s7 }
   0x9   :  { %3511 = sst [smem:[#allocation35_spill]] %s3476_s8 }
   0xa   :  { %3512 = sst [smem:[#allocation36_spill]] %s3477_s9 }
   0xb   :  { %3513 = sst [smem:[#allocation37_spill]] %s3478_s10 }
   0xc   :  { %15 = vsyncpa [#allocation4], 0 }
   0xd   :  { %17 = vsyncpa [#allocation4 + $0x1], 0 }
   0xe   :  { %18 = vsyncpa [#allocation7], 0 }
   0xf   :  { %20 = vsyncpa [#allocation7 + $0x1], 0 }
  0x10   :  { %21 = vsyncpa [#allocation10], 0 }
  0x11   :  { %22 = vsyncpa [#allocation5], 0 }
  0x12   :  { %24 = vsyncpa [#allocation5 + $0x1], 0  ;;  %s2887_s13 = smov 0   ;;  %s2889_s14 = smov 0  }
  0x13   :  { %s2891_s15 = smov 0   ;;  %s2893_s16 = smov 0  }
  0x14   :  { %s2895_s17 = smov 0   ;;  %s2897_s18 = smov 0  }
  0x15   :  { %s2899_s19 = smov 0   ;;  %s2901_s20 = smov 0  }
  0x16   :  { %s2903_s21 = smov 0   ;;  %s2905_s22 = smov 0  }
  0x17   :  { %s2907_s23 = smov 0  }
  0x18 LB: > { %3514 = sst [smem:[#allocation16_spill]] %s2773_s13  ;;  %s39_s24 = sadd.s32 1, %s2805_s21  ;;  %s2813_s23 = sphi %s2907_s23, %s30_s23   ;;  %s2809_s22 = sphi %s2905_s22, %s3568_s22   ;;  %s2805_s21 = sphi %s2903_s21, %s3567_s21   ;;  %s2801_s20 = sphi %s2901_s20, %s3566_s20   ;;  %s2797_s19 = sphi %s2899_s19, %s3565_s19   ;;  %s2793_s18 = sphi %s2897_s18, %s3564_s18   ;;  %s2789_s17 = sphi %s2895_s17, %s3572_s17   ;;  %s2785_s16 = sphi %s2893_s16, %s3571_s16   ;;  %s2781_s15 = sphi %s2891_s15, %s3562_s15   ;;  %s2777_s14 = sphi %s2889_s14, %s3570_s14   ;;  %s2773_s13 = sphi %s2887_s13, %s3569_s13  }
  0x19   : > { %3515 = sst [smem:[#allocation17_spill]] %s2781_s15  ;;  %s42_s25 = sadd.s32 1, %s2809_s22 }
  0x1a   : > { %3516 = sst [smem:[#allocation18_spill]] %s2793_s18  ;;  %p40_p0 = scmp.ge.s32.totalorder %s39_s24, 2 }
  0x1b   : > { %3517 = sst [smem:[#allocation19_spill]] %s2805_s21  ;;  %s122_s26 = sadd.s32 1, %s2793_s18 }
  0x1c   : > { %3518 = sst [smem:[#allocation20_spill]] %s2809_s22  ;;  %p129_p1 = scmp.ne.s32.totalorder %s2793_s18, %s2789_s17 }
  0x1d   : > { %3519 = sst [smem:[#allocation21_spill]] %s2813_s23  ;;  %p130_p2 = scmp.eq.s32.totalorder %s2813_s23, 0 }
  0x1e   : > { %s3574_s24 = smov (%p40_p0, %s39_s24), 0  ;;  %s3576_s25 = smov (!%p40_p0, %s42_s25), %s2809_s22 }
  0x1f   : > { %3520 = sst [smem:[#allocation22_spill]] %s3574_s24  ;;  %s119_s27 = ssub.s32 %s2805_s21, %s3574_s24 }
  0x20   : > { %p131_p3 = por %p130_p2, %p129_p1  ;;  %p44_p4 = scmp.ge.s32.totalorder %s3576_s25, 2 }
  0x21   : > { %p120_p5 = scmp.eq.s32.totalorder %s119_s27, 0  ;;  %p2345_p6 = scmp.lt.s32.totalorder %s2813_s23, 4 }
  0x22   : > { %s3578_s25 = smov (%p44_p4, %s3576_s25), 0  ;;  %s2962_s30 = sand.u32 1, %s2793_s18  }
  0x23   : > { %3521 = sst [smem:[#allocation23_spill]] %s3578_s25  ;;  %p2964_p7 = pnand %p2345_p6, %p131_p3 }
  0x24   : > { %s2957_s28 = scalar_select %p120_p5, %s2793_s18, %s122_s26  }
  0x25   : > { %s3523_s11 = scalar_select %p2964_p7, 1, 0 }
  0x26   : > { %3522 = sst [smem:[#allocation24_spill]] %s2957_s28  ;;  %s392_s12 = sand.u32 1, %s2813_s23  }
  0x27   : > { %s3485_s24 = sshll.u32 %s2962_s30, 7  ;;  %s3486_s10 = sshll.u32 %s2805_s21, 11 }
  0x28   : > { %s396_s27 = scalar_lea.vmem [#allocation6], %s3485_s24  ;;  %s3524_s5 = sld [smem:[#allocation32_spill]] }
  0x29   : > { %s403_s8 = sshll.u32 %s396_s27, 4  ;;  %s2982_s28 = scalar_lea.sflag [#allocation7], %s392_s12  ;;  %s2980_s8 = int_to_ptr.vmem [resolvable:$true] %s403_s8 }
  0x2a   : > { %p2988_p9 = pneg %p2964_p7 }
  0x2c   : > { %s3525_s24 = scalar_select %p2988_p9, 1, 0 }
  0x2e   : > { %s2978_s29 = scalar_lea.hbm %s3524_s5, %s3486_s10  ;;  %s2570_s26 = scalar_lea.hbm %s3524_s5, 4096 }
  0x2f   : > { %s2565_s18 = scalar_lea.hbm %s2978_s29, 2048  ;;  %p2571_p12 = scmp.lt.u32.totalorder %s2978_s29, %s3524_s5 }
  0x30   : > { %p2566_p8 = scmp.ne.s32.totalorder %s2978_s29, %s2565_s18  ;;  %p2572_p13 = scmp.lt.u32.totalorder %s2570_s26, %s2565_s18 }
  0x31   : > { %p2574_p1 = scmp.lt.u32.totalorder %s2565_s18, %s2978_s29 }
  0x32   : > { %p2568_p10 = pnand %p2988_p9, %p2566_p8  ;;  %p2573_p0 = por %p2572_p13, %p2571_p12 }
  0x34   : > { %p2569_p11 = pneg %p2568_p10  ;;  %p2575_p2 = por %p2574_p1, %p2573_p0 }
  0x36   : > { %p2576_p3 = pnand %p2575_p2, %p2569_p11 }
  0x38   : > { %2579 = shalt.err (!%p2576_p3)
}
  0x39   : > { %s2580_s12 = scalar_lea.vmem %s2980_s8, 2048  ;;  %s2815_s2 = smov [#allocation6]  }
  0x3a   : > { %p2581_p4 = scmp.ne.s32.totalorder %s2980_s8, %s2580_s12  ;;  %s2585_s27 = sshll.u32 %s2815_s2, 4  ;;  %s2586_s27 = int_to_ptr.vmem [resolvable:$false] %s2585_s27 }
  0x3b   : > { %s2587_s7 = scalar_lea.vmem %s2586_s27, 4096  ;;  %p2588_p8 = scmp.lt.s32.totalorder %s2980_s8, %s2586_s27 }
  0x3c   : > { %p2583_p5 = pnand %p2581_p4, %p2988_p9  ;;  %p2589_p10 = scmp.lt.s32.totalorder %s2587_s7, %s2580_s12 }
  0x3e   : > { %p2584_p6 = pneg %p2583_p5  ;;  %p2590_p12 = por %p2589_p10, %p2588_p8 }
  0x40   : > { %p2591_p13 = pnand %p2590_p12, %p2584_p6 }
  0x42   : > { %2594 = shalt.err (!%p2591_p13)
}
  0x43   : > { %s2816_s10 = smov 128   ;;  %s2817_s18 = smov 8  }
  0x44   : > { %2336 = dma.hbm_to_vmem [thread:$0]  (!%p2964_p7), %s2978_s29, 2048, %s2980_s8, %s2982_s28, %s2816_s10, %s2816_s10, %s2817_s18  }
  0x45   : > { %s3526_s26 = sshll.u32 %s2805_s21, 11  ;;  %s3527_s6 = sld [smem:[#allocation33_spill]] }
  0x46   : > { %s3528_s7 = sshll.u32 %s2962_s30, 7  ;;  %s3024_s0 = sadd.s32 4294967295, %s2813_s23  }
  0x47   : > { %s417_s5 = scalar_lea.vmem [#allocation8], %s3528_s7  ;;  %s2019_s1 = sadd.s32 4294967294, %s2813_s23  }
  0x48   : > { %s424_s4 = sshll.u32 %s417_s5, 4  ;;  %p135_p11 = scmp.ne.s32.totalorder %s2789_s17, %s2785_s16  ;;  %s3021_s4 = int_to_ptr.vmem [resolvable:$true] %s424_s4 }
  0x49   : > { %p3492_p0 = scmp.eq.s32.totalorder %s3024_s0, 0  ;;  %s3529_s8 = ssub.s32 %s2809_s22, %s3578_s25 }
  0x4a   : > { %p292_p1 = scmp.eq.s32.totalorder %s3529_s8, 0  ;;  %s294_s29 = sadd.s32 1, %s2781_s15 }
  0x4b   : > { %s3017_s27 = scalar_lea.hbm %s3527_s6, %s3526_s26  ;;  %p3036_p2 = por %p3492_p0, %p135_p11 }
  0x4c   : > { %p304_p3 = scmp.ne.s32.totalorder %s2781_s15, %s2777_s14  ;;  %p305_p4 = scmp.eq.s32.totalorder %s3024_s0, 3 }
  0x4d   : > { %s3530_s10 = scalar_select %p3036_p2, 1, 0 }
  0x4e   : > { %s3043_s5 = scalar_select %p292_p1, %s2781_s15, %s294_s29  }
  0x4f   : > { %p310_p5 = scmp.ne.s32.totalorder %s2777_s14, %s2773_s13  ;;  %p311_p6 = scmp.eq.s32.totalorder %s2019_s1, 3 }
  0x50   : > { %3531 = sst [smem:[#allocation25_spill]] %s3043_s5  ;;  %p2020_p8 = scmp.ge.s32.totalorder %s2813_s23, 1 }
  0x51   : > { %p3049_p10 = por %p305_p4, %p304_p3  ;;  %p318_p12 = scmp.lt.s32.totalorder %s2813_s23, 5 }
  0x52   : > { %p3054_p13 = por %p311_p6, %p310_p5  ;;  %s2818_s12 = smov [#allocation9]  }
  0x53   : > { %s3532_s16 = scalar_select %p3049_p10, 1, 0 }
  0x54   : > { %s3533_s18 = scalar_select %p3054_p13, 1, 0 }
  0x55   : > { %p3058_p11 = pnand %p2020_p8, %p318_p12  ;;  %s336_s2 = sshll.u32 %s2818_s12, 4  ;;  %s337_s2 = int_to_ptr.vmem [resolvable:$true] %s336_s2 }
  0x56   : > { %3534 = sst [smem:[#allocation26_spill]] %s3533_s18  ;;  %s2310_s7 = smul.u32 192, %s2962_s30 }
  0x57   : > { %s3535_s26 = scalar_select %p3058_p11, 1, 0 }
  0x58   : > { %p2326_p1 = pneg %p3058_p11  ;;  %s2311_s8 = smul.u32 3072, %s2805_s21 }
  0x59   : > { %s3537_s9 = sld [smem:[#allocation36_spill]] }
  0x5a   : > { %p3066_p3 = pnand %p2326_p1, %p3492_p0 }
  0x5c   : > { %p2597_p5 = pneg %p3066_p3 }
  0x5f   : > { %s2595_s22 = scalar_lea.hbm %s3537_s9, 1024 }
  0x60   : > { %p2596_p4 = scmp.ne.s32.totalorder %s3537_s9, %s2595_s22  ;;  %p2602_p12 = scmp.lt.u32.totalorder %s2595_s22, %s3537_s9 }
  0x62   : > { %p2598_p6 = pnand %p2597_p5, %p2596_p4 }
  0x64   : > { %p2599_p8 = pneg %p2598_p6 }
  0x66   : > { %p2604_p1 = pnand %p2602_p12, %p2599_p8 }
  0x68   : > { %2607 = shalt.err (!%p2604_p1)
}
  0x69   : > { %s2608_s13 = scalar_lea.vmem %s337_s2, 1024  ;;  %p2616_p2 = scmp.lt.s32.totalorder %s337_s2, %s337_s2 }
  0x6a   : > { %p2609_p0 = scmp.ne.s32.totalorder %s337_s2, %s2608_s13  ;;  %p2617_p11 = scmp.lt.s32.totalorder %s2608_s13, %s2608_s13 }
  0x6c   : > { %p2611_p13 = pnand %p2609_p0, %p2597_p5  ;;  %p2618_p7 = por %p2617_p11, %p2616_p2 }
  0x6e   : > { %p2612_p10 = pneg %p2611_p13 }
  0x70   : > { %p2619_p9 = pnand %p2618_p7, %p2612_p10 }
  0x72   : > { %2622 = shalt.err (!%p2619_p9)
}
  0x73   : > { %s2819_s15 = smov 64   ;;  %s2820_s25 = smov 4  }
  0x74   : > { %2329 = dma.hbm_to_vmem [thread:$0]  (!%p3066_p3), %s3537_s9, 1024, %s337_s2, [#allocation10], %s2819_s15, %s2819_s15, %s2820_s25  }
  0x75   : > { %s3538_s3 = sld [smem:[#allocation30_spill]]  ;;  %s367_s12 = scalar_lea.vmem [#allocation3], %s2310_s7 }
  0x76   : > { %s374_s21 = sshll.u32 %s367_s12, 4  ;;  %s364_s1 = scalar_lea.sflag [#allocation4], %s2962_s30  ;;  %s3096_s21 = int_to_ptr.vmem [resolvable:$true] %s374_s21 }
  0x77   : > { %p3539_p9 = scmp.ne.s32.totalorder %s3525_s24, 0 }
  0x7b   : > { %s3094_s13 = scalar_lea.hbm %s3538_s3, %s2311_s8  ;;  %s2628_s5 = scalar_lea.hbm %s3538_s3, 6144 }
  0x7c   : > { %s2623_s23 = scalar_lea.hbm %s3094_s13, 3072  ;;  %p2629_p10 = scmp.lt.u32.totalorder %s3094_s13, %s3538_s3 }
  0x7d   : > { %p2624_p7 = scmp.ne.s32.totalorder %s3094_s13, %s2623_s23  ;;  %p2630_p13 = scmp.lt.u32.totalorder %s2628_s5, %s2623_s23 }
  0x7e   : > { %p2632_p3 = scmp.lt.u32.totalorder %s2623_s23, %s3094_s13 }
  0x7f   : > { %p2626_p0 = pnand %p2624_p7, %p3539_p9  ;;  %p2631_p11 = por %p2630_p13, %p2629_p10 }
  0x81   : > { %p2627_p2 = pneg %p2626_p0  ;;  %p2633_p4 = por %p2632_p3, %p2631_p11 }
  0x83   : > { %p2634_p5 = pnand %p2633_p4, %p2627_p2 }
  0x85   : > { %2637 = shalt.err (!%p2634_p5)
}
  0x86   : > { %s2638_s7 = scalar_lea.vmem %s3096_s21, 3072  ;;  %s2821_s29 = smov [#allocation3]  }
  0x87   : > { %p2639_p6 = scmp.ne.s32.totalorder %s3096_s21, %s2638_s7  ;;  %s2643_s12 = sshll.u32 %s2821_s29, 4  ;;  %s2644_s12 = int_to_ptr.vmem [resolvable:$false] %s2643_s12 }
  0x88   : > { %s2645_s2 = scalar_lea.vmem %s2644_s12, 6144  ;;  %p2646_p1 = scmp.lt.s32.totalorder %s3096_s21, %s2644_s12 }
  0x89   : > { %p2641_p8 = pnand %p2639_p6, %p3539_p9  ;;  %p2647_p7 = scmp.lt.s32.totalorder %s2645_s2, %s2638_s7 }
  0x8b   : > { %p2642_p12 = pneg %p2641_p8  ;;  %p2648_p0 = por %p2647_p7, %p2646_p1 }
  0x8d   : > { %p2649_p10 = pnand %p2648_p0, %p2642_p12 }
  0x8f   : > { %2652 = shalt.err (!%p2649_p10)
}
  0x90   : > { %s2822_s23 = smov 192   ;;  %s2823_s22 = smov 12  }
  0x91   : > { %p3540_p2 = scmp.ne.s32.totalorder %s3523_s11, 0  ;;  %s2653_s5 = scalar_lea.hbm %s3017_s27, 2048 }
  0x92   : > { %p2654_p13 = scmp.ne.s32.totalorder %s3017_s27, %s2653_s5  ;;  %s2658_s7 = scalar_lea.hbm %s3527_s6, 4096 }
  0x93   : > { %2333 = dma.hbm_to_vmem [thread:$0]  (!%p3540_p2), %s3094_s13, 3072, %s3096_s21, %s364_s1, %s2822_s23, %s2822_s23, %s2823_s22  }
  0x94   : > { %p2656_p11 = pnand %p2654_p13, %p3539_p9  ;;  %p2659_p4 = scmp.lt.u32.totalorder %s3017_s27, %s3527_s6 }
  0x95   : > { %p2660_p5 = scmp.lt.u32.totalorder %s2658_s7, %s2653_s5  ;;  %p2662_p8 = scmp.lt.u32.totalorder %s2653_s5, %s3017_s27 }
  0x96   : > { %p2657_p3 = pneg %p2656_p11 }
  0x97   : > { %p2661_p6 = por %p2660_p5, %p2659_p4 }
  0x99   : > { %p2663_p12 = por %p2662_p8, %p2661_p6 }
  0x9b   : > { %p2664_p1 = pnand %p2663_p12, %p2657_p3 }
  0x9d   : > { %2667 = shalt.err (!%p2664_p1)
}
  0x9e   : > { %s2668_s21 = scalar_lea.vmem %s3021_s4, 2048  ;;  %s2824_s30 = smov [#allocation8]  }
  0x9f   : > { %p2669_p7 = scmp.ne.s32.totalorder %s3021_s4, %s2668_s21  ;;  %s2673_s13 = sshll.u32 %s2824_s30, 4  ;;  %s2674_s13 = int_to_ptr.vmem [resolvable:$false] %s2673_s13 }
  0xa0   : > { %s2675_s1 = scalar_lea.vmem %s2674_s13, 4096  ;;  %p2676_p13 = scmp.lt.s32.totalorder %s3021_s4, %s2674_s13 }
  0xa1   : > { %p2671_p0 = pnand %p2669_p7, %p3539_p9  ;;  %p2677_p11 = scmp.lt.s32.totalorder %s2675_s1, %s2668_s21 }
  0xa3   : > { %p2672_p10 = pneg %p2671_p0  ;;  %p2678_p4 = por %p2677_p11, %p2676_p13 }
  0xa5   : > { %p2679_p5 = pnand %p2678_p4, %p2672_p10 }
  0xa7   : > { %2682 = shalt.err (!%p2679_p5)
}
  0xa8   : > { %2339 = dma.hbm_to_vmem [thread:$0]  (!%p3540_p2), %s3017_s27, 2048, %s3021_s4, %s2982_s28, %s2819_s15, %s2819_s15, %s2820_s25  }
  0xa9   : > { %p3541_p9 = scmp.ne.s32.totalorder %s3535_s26, 0 }
  0xaa   : > { %s446_s24 = sand.u32 (!%p3541_p9), 1, %s2789_s17   ;;  %p3542_p3 = scmp.ne.s32.totalorder (!%p3541_p9), %s3530_s10, 0 }
  0xab   : > { %444 = sbr.rel (%p3541_p9) target bundleno = 3401 (0xd49), region = 60  ;;  %s447_s23 = scalar_lea.sflag (!%p3541_p9), [#allocation4], %s446_s24 }
  0xac   : > { %s2312_s2 = smul.u32 (!%p3541_p9), 192, %s446_s24 }
  0xae   : > { %s3150_s22 = scalar_lea.vmem (!%p3541_p9), [#allocation3], %s2312_s2 }
  0xb2   : > { %2756 = dma.done.wait (%p3542_p3), %s447_s23, 3072  }
  0xb3   : > { %2758 = vsyncadd (%p3542_p3), %s447_s23, 4294964224  ;;  %s455_s11 = sand.u32 1, %s3024_s0   ;;  %s2031_s5 = sshll.u32 %s446_s24, 7 }
  0xb4   : > { %s456_s4 = scalar_lea.sflag [#allocation7], %s455_s11  ;;  %s3157_s28 = scalar_lea.vmem [#allocation6], %s2031_s5 }
  0xb5   : > { %2760 = dma.done.wait (%p3542_p3), %s456_s4, 4096  }
  0xb6   : > { %2762 = vsyncadd (%p3542_p3), %s456_s4, 4294963200  ;;  %s3163_s27 = scalar_lea.vmem [#allocation8], %s2031_s5  ;;  %p3543_p2 = scmp.eq.s32.totalorder %s3024_s0, 0 }
  0xb8   : > { %2764 = dma.done.wait (%p3543_p2), [#allocation10], 1024   ;;  %p3544_p6 = pmov %p3543_p2 }
  0xb9   : > { %p535_p8 = scmp.lt.s32.totalorder %s2801_s20, 1  ;;  %p542_p12 = scmp.lt.s32.totalorder %s2797_s19, 1 }
  0xba   : > { %2766 = vsyncadd (%p3544_p6), [#allocation10], 4294966272  ;;  %s3545_s7 = sld [smem:[#allocation28_spill]]  ;;  %s3546_s21 = sld [smem:[#allocation27_spill]] }
  0xbb   : > { %s3173_s15 = scalar_select %p535_p8, %s2801_s20, 1 }
  0xbc   : > { %s543_s10 = scalar_select %p542_p12, %s2797_s19, 1 }
  0xbd   : > { %s2034_s25 = sshll.u32 %s3173_s15, 3  ;;  %s3547_s2 = sld [smem:[#allocation31_spill]] }
  0xbe   : > { %s2134_s13 = sshll.u32 %s543_s10, 6  ;;  %s2313_s11 = smul.u32 24, %s543_s10 }
  0xbf   : > { %s3548_s26 = sld [smem:[#allocation34_spill]]  ;;  %s3549_s6 = sand.u32 1, %s2777_s14  }
  0xc0   : > { %s541_s0 = scalar_lea.vmem %s3545_s7, %s3173_s15  ;;  %s538_s30 = scalar_lea.vmem %s3546_s21, %s2034_s25 }
  0xc1   : > { %s3196_s9 = scalar_lea.vmem [#allocation11], %s3549_s6  ;;  %p2038_p1 = scmp.ne.s32.totalorder %s2797_s19, 0 }
  0xc2   : > { %v557_v0 = vld [vmem:[%s538_s30] sm:$0xff] (!%p2038_p1)  ;;  %s3550_s25 = sld [smem:[#allocation29_spill]] (!%p2038_p1) }
  0xc3   : > { %s3187_s23 = scalar_lea.vmem %s3547_s2, %s2134_s13  ;;  %556 = sbr.rel (%p2038_p1) target bundleno = 507 (0x1fb), region = 80  ;;  %560 = vadd.xlane.f32.xlu0 (!%p2038_p1), %v557_v0 }
  0xc5   : > { %s3192_s3 = scalar_lea.vmem %s3548_s26, %s2313_s11 }
  0xc8   : > { %v2039_v9 = vld [vmem:[%s3550_s25] ss:$0 sm:$0xff] (!%p2038_p1)  ;;  %v2040_v11 = vld [vmem:[%s3550_s25 + $0x1] ss:$0 sm:$0xff] (!%p2038_p1) }
 0x150   : > { %v561_v1 = vpop.xlane.xlu0 %560 }
 0x151   : > { %v563_v2 = vmul.f32 0.0078125, %v561_v1 }
 0x153   : > { %v564_v3 = vsub.f32 %v557_v0, %v563_v2 }
 0x155   : > { %v565_v4 = vmul.f32 %v564_v3, %v564_v3 }
 0x157   : > { %566 = vadd.xlane.f32.xlu0 %v565_v4 }
 0x1e4   : > { %v567_v5 = vpop.xlane.xlu0 %566 }
 0x1e5   : > { %v568_v6 = vmul.f32 0.0078125, %v567_v5 }
 0x1e7   : > { %v569_v7 = vadd.f32 1e-12, %v568_v6 }
 0x1e9   : > { %2449 = vrsqrt.f32 %v569_v7 }
 0x1f3   : > { %v2450_v8 = vpop.eup %2449 }
 0x1f4   : > { %v571_v10 = vmul.f32 %v2450_v8, %v564_v3 }
 0x1f6   : > { %v576_v12 = vmul.f32 %v2039_v9, %v571_v10 }
 0x1f8   : > { %v581_v13 = vadd.f32 %v2040_v11, %v576_v12 }
 0x1fa   : > { %582 = vst [vmem:[#allocation2] sm:$0xff] %v581_v13 }
 0x1fb PF: > { %v2451_v14 = vld [vmem:[%s3150_s22 + $0x4] ss:$12 sps:$4 sm:$0xff]   ;;  %v2453_v15 = vld [vmem:[%s3150_s22] ss:$12 sps:$4 sm:$0xff]   ;;  %v2825_v16 = vmov 0   ;;  %v2826_v33 = vmov 0.0   ;;  %v621_v34 = vlaneseq }
 0x1fc   : > { %793 = vmatprep.mubr.bf16.mxu0 %v2825_v16  ;;  %761 = vmatprep.subr.bf16.mxu0 %v2451_v14  ;;  %v2454_v17 = vld [vmem:[%s3150_s22 + $0x1c] ss:$12 sps:$4 sm:$0xff]   ;;  %v2456_v18 = vld [vmem:[%s3150_s22 + $0x18] ss:$12 sps:$4 sm:$0xff]   ;;  %v2457_v19 = vld [vmem:[%s3150_s22 + $0x34] ss:$12 sps:$4 sm:$0xff]  }
 0x1fd   : > { %762 = vmatpush1.bf16.msra.mxu0 %v2453_v15  ;;  %v2459_v20 = vld [vmem:[%s3150_s22 + $0x30] ss:$12 sps:$4 sm:$0xff]   ;;  %v2460_v21 = vld [vmem:[%s3150_s22 + $0x4c] ss:$12 sps:$4 sm:$0xff]   ;;  %v2462_v22 = vld [vmem:[%s3150_s22 + $0x48] ss:$12 sps:$4 sm:$0xff]   ;;  %2202 = vmatprep.subr.bf16.mxu1 %v2826_v33 }
 0x1fe   : > { %763 = vmatprep.subr.bf16.mxu0 %v2454_v17  ;;  %v2463_v23 = vld [vmem:[%s3150_s22 + $0x64] ss:$12 sps:$4 sm:$0xff]   ;;  %v2465_v24 = vld [vmem:[%s3150_s22 + $0x60] ss:$12 sps:$4 sm:$0xff]   ;;  %v2466_v25 = vld [vmem:[%s3150_s22 + $0x7c] ss:$12 sps:$4 sm:$0xff]  }
 0x1ff   : > { %v2468_v26 = vld [vmem:[%s3150_s22 + $0x78] ss:$12 sps:$4 sm:$0xff]   ;;  %v2469_v27 = vld [vmem:[%s3150_s22 + $0x94] ss:$12 sps:$4 sm:$0xff]   ;;  %v2471_v28 = vld [vmem:[%s3150_s22 + $0x90] ss:$12 sps:$4 sm:$0xff]  }
 0x200   : > { %v2472_v29 = vld [vmem:[%s3150_s22 + $0xac] ss:$12 sps:$4 sm:$0xff]   ;;  %v2474_v30 = vld [vmem:[%s3150_s22 + $0xa8] ss:$12 sps:$4 sm:$0xff]   ;;  %vm2827_vm0 = vmmov 0   ;;  %v3235_v35 = vshrl.u32 %v621_v34, 7 }
 0x201   : > { %764 = vmatpush1.bf16.msra.mxu0 %v2456_v18  ;;  %v3222_v31 = vld [vmem:[#allocation2] sm:$0xff]  ;;  %2218 = vmatprep.mubr.msk.bf16.mxu1 %vm2827_vm0, %v2826_v33  ;;  %v3241_v37 = vld [vmem:[%s3192_s3 + $0x8] sm:$0xff]  ;;  %vm867_vm1 = vcmask 523264   ;;  %s2828_s18 = smov 64   ;;  %v2475_v50 = vld [vmem:[%s3150_s22 + $0x8] ss:$12 sps:$4 sm:$0xff]  }
 0x202   : > { %765 = vmatprep.subr.bf16.mxu0 %v2457_v19  ;;  %v3226_v32 = vpack.c.bf16 %v3222_v31, %v3222_v31  ;;  %v3238_v36 = vsub.s32 0, %v3235_v35  ;;  %v3244_v38 = vld [vmem:[%s3192_s3] sm:$0xff]  ;;  %2203 = vmatpush3.bf16.msra.mxu1 %v2475_v50  ;;  %v2476_v51 = vld [vmem:[%s3150_s22 + $0x20] ss:$12 sps:$4 sm:$0xff]   ;;  %v2479_v54 = vld [vmem:[%s3150_s22 + $0x68] ss:$12 sps:$4 sm:$0xff]  }
 0x203   : > { %2204 = vmatprep.subr.bf16.mxu1 %v2826_v33  ;;  %v2477_v52 = vld [vmem:[%s3150_s22 + $0x38] ss:$12 sps:$4 sm:$0xff]   ;;  %v2478_v53 = vld [vmem:[%s3150_s22 + $0x50] ss:$12 sps:$4 sm:$0xff]   ;;  %v2480_v55 = vld [vmem:[%s3150_s22 + $0x80] ss:$12 sps:$4 sm:$0xff]  }
 0x204   : > { %v628_v39 = vrot.slane %v3241_v37, %v3238_v36  ;;  %v624_v40 = vrot.slane %v3244_v38, %v3238_v36  ;;  %v2481_v58 = vld [vmem:[%s3150_s22 + $0x98] ss:$12 sps:$4 sm:$0xff]   ;;  %v2482_v59 = vld [vmem:[%s3150_s22 + $0xb0] ss:$12 sps:$4 sm:$0xff]   ;;  %vm914_vm2 = vcmask 64512   ;;  %v588_v13 = vld [vmem:[%s3192_s3 + $0x10] sm:$0xff] }
 0x205   : > { %766 = vmatpush1.bf16.msra.mxu0 %v2459_v20  ;;  %v2065_v61 = vld [vmem:[%s541_s0] ss:$0 sm:$0xff]  ;;  %v632_v15 = vrot.slane %v588_v13, %v3238_v36  ;;  %vm930_vm3 = vcmask 1043456   ;;  %v2485_v50 = vld [vmem:[%s3187_s23 + $0x10] sm:$0xff]   ;;  %p2112_p7 = scmp.ne.s32.totalorder %s2797_s19, 1 }
 0x206   : > { %767 = vmatprep.subr.bf16.mxu0 %v2460_v21  ;;  %2205 = vmatpush3.bf16.msra.mxu1 %v2476_v51  ;;  %v2486_v51 = vld [vmem:[%s3187_s23 + $0x18] sm:$0xff]   ;;  %vm2830_vm4 = vmmov (!%p2112_p7), 0   ;;  %s3553_s25 = sld [smem:[#allocation29_spill]] (!%p2112_p7) }
 0x207   : > { %2206 = vmatprep.subr.bf16.mxu1 %v2826_v33  ;;  %v2494_v13 = vld [vmem:[%s3157_s28 + $0x10] ss:$8 sps:$4 sm:$0xff]  }
 0x209   : > { %768 = vmatpush1.bf16.msra.mxu0 %v2462_v22 }
 0x20a   : > { %769 = vmatprep.subr.bf16.mxu0 %v2463_v23  ;;  %2207 = vmatpush3.bf16.msra.mxu1 %v2477_v52  ;;  %v2490_v52 = vld [vmem:[%s3187_s23 + $0x38] sm:$0xff]  }
 0x20b   : > { %2208 = vmatprep.subr.bf16.mxu1 %v2826_v33 }
 0x20d   : > { %770 = vmatpush1.bf16.msra.mxu0 %v2465_v24 }
 0x20e   : > { %771 = vmatprep.subr.bf16.mxu0 %v2466_v25  ;;  %2209 = vmatpush3.bf16.msra.mxu1 %v2478_v53 }
 0x20f   : > { %2210 = vmatprep.subr.bf16.mxu1 %v2826_v33 }
 0x211   : > { %772 = vmatpush1.bf16.msra.mxu0 %v2468_v26 }
 0x212   : > { %773 = vmatprep.subr.bf16.mxu0 %v2469_v27  ;;  %2211 = vmatpush3.bf16.msra.mxu1 %v2479_v54 }
 0x213   : > { %2212 = vmatprep.subr.bf16.mxu1 %v2826_v33 }
 0x215   : > { %774 = vmatpush1.bf16.msra.mxu0 %v2471_v28 }
 0x216   : > { %775 = vmatprep.subr.bf16.mxu0 %v2472_v29  ;;  %2213 = vmatpush3.bf16.msra.mxu1 %v2480_v55 }
 0x217   : > { %2214 = vmatprep.subr.bf16.mxu1 %v2826_v33 }
 0x219   : > { %776 = vmatpush1.bf16.msra.mxu0 %v2474_v30 }
 0x21a   : > { %2222 = vmatprep.subr.bf16.mxu0 %v2826_v33  ;;  %2215 = vmatpush3.bf16.msra.mxu1 %v2481_v58 }
 0x21b   : > { %2216 = vmatprep.subr.bf16.mxu1 %v2826_v33 }
 0x21c   : > { %794 = vmatmul.mubr.bf16.vlgmr.msra.gmra.mrb[0].mxu0 %v3226_v32 }
 0x21d   : > { %2224 = vmatprep.mubr.msk.bf16.mxu0 %vm2827_vm0, %v2826_v33 }
 0x21e   : > { %2217 = vmatpush3.bf16.msra.mxu1 %v2482_v59 }
 0x21f   : > { %2228 = vmatprep.subr.bf16.mxu1 %v2826_v33 }
 0x221   : > { %2219 = vmatmul.mubr.bf16.vlgmr.msra.gmra.mrb[0].mxu1 %v3226_v32 }
 0x222   : > { %2230 = vmatprep.mubr.msk.bf16.mxu1 %vm2827_vm0, %v2826_v33 }
 0x2ef   : > { %v795_v41 = vpop.f32.mrb[0].mxu0 }
 0x2f0   : > { %v797_v42 = vpop.f32.mrb[1].mxu0  ;;  %v796_v46 = vadd.f32 %v795_v41, %v624_v40  ;;  %v2488_v40 = vld [vmem:[%s3187_s23 + $0x28] sm:$0xff]   ;;  %v2489_v41 = vld [vmem:[%s3187_s23 + $0x30] sm:$0xff]  }
 0x2f1   : > { %v798_v43 = vadd.f32 %v797_v42, %v628_v39  ;;  %v799_v44 = vpop.f32.mrb[2].mxu0  ;;  %v2487_v39 = vld [vmem:[%s3187_s23 + $0x20] sm:$0xff]  }
 0x2f2   : > { %v800_v45 = vpop.f32.mrb[3].mxu0  ;;  %v858_v49 = vpack.c.bf16 %v796_v46, %v796_v46 }
 0x2f3   : > { %v859_v47 = vpack.c.bf16 %v798_v43, %v798_v43 }
 0x2f4   : > { %v836_v14 = vpop.f32.mrb[0].mxu1 }
 0x2f5   : > { %v872_v48 = vsel %vm867_vm1, %v859_v47, 0  ;;  %979 = vrot.lane.b32.xlu0 %v859_v47, %s2828_s18  ;;  %v2220_v17 = vpop.f32.mrb[1].mxu1  ;;  %v837_v19 = vadd.f32 %v836_v14, %v632_v15  ;;  %v2483_v47 = vld [vmem:[%s3187_s23] sm:$0xff]   ;;  %v2499_v14 = vld [vmem:[%s3157_s28 + $0x24] ss:$8 sps:$4 sm:$0xff]  }
 0x2f6   : > { %2223 = vmatpush3.bf16.xpose.msra.mxu0 %v872_v48  ;;  %v839_v18 = vpop.f32.mrb[2].mxu1  ;;  %v2497_v15 = vld [vmem:[%s3157_s28 + $0x20] ss:$8 sps:$4 sm:$0xff]  }
 0x2f7   : > { %2234 = vmatprep.subr.bf16.mxu0 %v2826_v33  ;;  %v2221_v20 = vpop.f32.mrb[3].mxu1  ;;  %v860_v21 = vpack.c.bf16 %v837_v19, %v837_v19 }
 0x2f8   : > { %v2502_v20 = vld [vmem:[%s3157_s28 + $0x34] ss:$8 sps:$4 sm:$0xff]  }
 0x2f9   : > { %976 = vrot.lane.b32.xlu0 %v858_v49, %s2828_s18  ;;  %v932_v22 = vsel %vm930_vm3, %v860_v21, 0 }
 0x2fa   : > { %2229 = vmatpush3.bf16.msra.mxu1 %v932_v22  ;;  %v2505_v22 = vld [vmem:[%s3157_s28 + $0x44] ss:$8 sps:$4 sm:$0xff]  }
 0x2fb   : > { %2240 = vmatprep.subr.bf16.mxu1 %v2826_v33 }
 0x2fd   : > { %2225 = vmatmul.mubr.msk.bf16.vlgmr.msra.gmra.mrb[4].mxu0 %vm867_vm1, %v858_v49  ;;  %v2484_v49 = vld [vmem:[%s3187_s23 + $0x8] sm:$0xff]  }
 0x2fe   : > { %2236 = vmatprep.mubr.msk.bf16.mxu0 %vm2827_vm0, %v2826_v33 }
 0x367   : > { %v980_v56 = vpop.permute.xlu0 %979 }
 0x368   : > { %v985_v57 = vsel %vm867_vm1, %v980_v56, 0 }
 0x369   : > { %2235 = vmatpush3.bf16.xpose.msra.mxu0 %v985_v57 }
 0x36a   : > { %2246 = vmatprep.subr.bf16.mxu0 %v2826_v33 }
 0x36b   : > { %v977_v60 = vpop.permute.xlu0 %976 }
 0x370   : > { %2237 = vmatmul.mubr.msk.bf16.vlgmr.msra.gmra.mrb[8].mxu0 %vm867_vm1, %v977_v60 }
 0x371   : > { %2254 = vmatprep.mubr.msk.bf16.mxu0 %vm2827_vm0, %v2826_v33  ;;  %2247 = vmatpush3.bf16.msra.mxu0 %v2487_v39  ;;  %v1248_v39 = vsub.s32 3, %v3235_v35 }
 0x372   : > { %2248 = vmatprep.subr.bf16.mxu0 %v2826_v33 }
 0x375   : > { %2249 = vmatpush3.bf16.msra.mxu0 %v2488_v40 }
 0x376   : > { %2250 = vmatprep.subr.bf16.mxu0 %v2826_v33 }
 0x379   : > { %2251 = vmatpush3.bf16.msra.mxu0 %v2489_v41 }
 0x37a   : > { %2252 = vmatprep.subr.bf16.mxu0 %v2826_v33 }
 0x37d   : > { %2253 = vmatpush3.bf16.msra.mxu0 %v2490_v52  ;;  %v2520_v52 = vld [vmem:[%s3163_s27 + $0x10] sm:$0xff]  }
 0x3d0   : > { %v908_v62 = vpop.f32.mrb[4].mxu0 }
 0x3d1   : > { %v909_v63 = vadd.f32 %v2065_v61, %v908_v62  ;;  %v2226_v0 = vpop.f32.mrb[5].mxu0 }
 0x3d2   : > { %v911_v1 = vpop.f32.mrb[6].mxu0 }
 0x3d3   : > { %v2227_v2 = vpop.f32.mrb[7].mxu0  ;;  %v915_v3 = vsel %vm914_vm2, %v909_v63, -inf }
 0x3d4   : > { %916 = vmax.xlane.f32.xlu1 %v915_v3  ;;  %v1225_v2 = vsub.s32 1, %v3235_v35 }
 0x3d6   : > { %v1226_v3 = vrot.slane %v3244_v38, %v1225_v2 }
 0x443   : > { %v1021_v4 = vpop.f32.mrb[8].mxu0 }
 0x444   : > { %v1022_v5 = vadd.f32 %v2065_v61, %v1021_v4  ;;  %v2238_v6 = vpop.f32.mrb[9].mxu0 }
 0x445   : > { %v1024_v7 = vpop.f32.mrb[10].mxu0 }
 0x446   : > { %v2239_v8 = vpop.f32.mrb[11].mxu0  ;;  %v1027_v9 = vsel %vm914_vm2, %v1022_v5, -inf }
 0x447   : > { %1028 = vmax.xlane.f32.xlu1 %v1027_v9 }
 0x461   : > { %v917_v10 = vpop.xlane.xlu1 %916 }
 0x462   : > { %v918_v11 = vsub.f32 %v909_v63, %v917_v10  ;;  %v2491_v10 = vld [vmem:[%s3157_s28] ss:$8 sps:$4 sm:$0xff]  }
 0x464   : > { %v919_v12 = vmul.f32 1.442695, %v918_v11  ;;  %v2493_v11 = vld [vmem:[%s3157_s28 + $0x4] ss:$8 sps:$4 sm:$0xff]  }
 0x465   : > { %1356 = vmatprep.subr.bf16.mxu0 %v2493_v11 }
 0x466   : > { %2531 = vpow2.f32 %v919_v12  ;;  %v2496_v12 = vld [vmem:[%s3157_s28 + $0x14] ss:$8 sps:$4 sm:$0xff]  }
 0x470   : > { %v2532_v23 = vpop.eup %2531 }
 0x471   : > { %v921_v24 = vsel %vm914_vm2, %v2532_v23, 0.0 }
 0x472   : > { %922 = vadd.xlane.f32.xlu0 %v921_v24  ;;  %v2508_v24 = vld [vmem:[%s3157_s28 + $0x54] ss:$8 sps:$4 sm:$0xff]  }
 0x4d4   : > { %v1029_v25 = vpop.xlane.xlu1 %1028 }
 0x4d5   : > { %v1030_v26 = vsub.f32 %v1022_v5, %v1029_v25  ;;  %v2506_v25 = vld [vmem:[%s3157_s28 + $0x50] ss:$8 sps:$4 sm:$0xff]  }
 0x4d7   : > { %v1031_v27 = vmul.f32 1.442695, %v1030_v26  ;;  %v2511_v26 = vld [vmem:[%s3157_s28 + $0x64] ss:$8 sps:$4 sm:$0xff]  }
 0x4d9   : > { %2533 = vpow2.f32 %v1031_v27  ;;  %v2509_v27 = vld [vmem:[%s3157_s28 + $0x60] ss:$8 sps:$4 sm:$0xff]  }
 0x4e3   : > { %v2534_v28 = vpop.eup %2533 }
 0x4e4   : > { %v1033_v29 = vsel %vm914_vm2, %v2534_v28, 0.0 }
 0x4e5   : > { %1034 = vadd.xlane.f32.xlu1 %v1033_v29  ;;  %v2512_v29 = vld [vmem:[%s3157_s28 + $0x70] ss:$8 sps:$4 sm:$0xff]  }
 0x4f6   : > { %1040 = vrot.lane.b32.xlu1 %v860_v21, %s2828_s18  ;;  %v2500_v21 = vld [vmem:[%s3157_s28 + $0x30] ss:$8 sps:$4 sm:$0xff]  }
 0x4ff   : > { %v923_v30 = vpop.xlane.xlu0 %922 }
 0x500   : > { %2535 = vrcp.f32 %v923_v30 }
 0x50a   : > { %v2536_v32 = vpop.eup %2535 }
 0x50b   : > { %v925_v34 = vmul.f32 %v2536_v32, %v2532_v23  ;;  %v2503_v23 = vld [vmem:[%s3157_s28 + $0x40] ss:$8 sps:$4 sm:$0xff]  }
 0x50d   : > { %v926_v36 = vpack.c.bf16 %v925_v34, %v925_v34 }
 0x50f   : > { %2231 = vmatmul.mubr.msk.bf16.vlgmr.msra.gmra.mrb[4].mxu1 %vm914_vm2, %v926_v36  ;;  %v1243_v36 = vsub.s32 2, %v3235_v35 }
 0x510   : > { %2242 = vmatprep.mubr.msk.bf16.mxu1 %vm2827_vm0, %v2826_v33 }
 0x511   : > { %v1244_v40 = vrot.slane %v3244_v38, %v1243_v36 }
 0x572   : > { %v1035_v42 = vpop.xlane.xlu1 %1034 }
 0x573   : > { %2537 = vrcp.f32 %v1035_v42 }
 0x576   : > { %v1041_v43 = vpop.permute.xlu1 %1040 }
 0x577   : > { %v1046_v44 = vsel %vm930_vm3, %v1041_v43, 0  ;;  %v1249_v43 = vrot.slane %v3244_v38, %v1248_v39 }
 0x578   : > { %2241 = vmatpush3.bf16.msra.mxu1 %v1046_v44 }
 0x579   : > { %2258 = vmatprep.subr.bf16.mxu1 %v2826_v33 }
 0x57d   : > { %v2538_v45 = vpop.eup %2537 }
 0x57e   : > { %v1037_v46 = vmul.f32 %v2538_v45, %v2534_v28  ;;  %v2514_v28 = vld [vmem:[%s3157_s28 + $0x74] ss:$8 sps:$4 sm:$0xff]   ;;  %s3552_s28 = sld [smem:[#allocation35_spill]] (!%p2112_p7) }
 0x580   : > { %v1038_v48 = vpack.c.bf16 %v1037_v46, %v1037_v46 }
 0x582   : > { %2243 = vmatmul.mubr.msk.bf16.vlgmr.msra.gmra.mrb[8].mxu1 %vm914_vm2, %v1038_v48  ;;  %v2516_v48 = vld [vmem:[%s3163_s27] sm:$0xff]  }
 0x583   : > { %2259 = vmatpush3.bf16.msra.mxu1 %v2483_v47  ;;  %2266 = vmatprep.mubr.msk.bf16.mxu1 %vm2827_vm0, %v2826_v33  ;;  %v2515_v47 = vld [vmem:[%s3163_s27 + $0x40] sm:$0xff]  }
 0x584   : > { %2260 = vmatprep.subr.bf16.mxu1 %v2826_v33 }
 0x587   : > { %2261 = vmatpush3.bf16.msra.mxu1 %v2484_v49  ;;  %v2517_v49 = vld [vmem:[%s3163_s27 + $0x48] sm:$0xff]  }
 0x588   : > { %2262 = vmatprep.subr.bf16.mxu1 %v2826_v33 }
 0x58b   : > { %2263 = vmatpush3.bf16.msra.mxu1 %v2485_v50  ;;  %v2518_v50 = vld [vmem:[%s3163_s27 + $0x8] sm:$0xff]  }
 0x58c   : > { %2264 = vmatprep.subr.bf16.mxu1 %v2826_v33 }
 0x58f   : > { %2265 = vmatpush3.bf16.msra.mxu1 %v2486_v51  ;;  %v2519_v51 = vld [vmem:[%s3163_s27 + $0x50] sm:$0xff]  }
 0x590   : > { %2162 = vmatprep.subr.bf16.mxu1 %v2515_v47  ;;  %v1603_v47 = vsub.s32 6, %v3235_v35 }
 0x5e2   : > { %v968_v53 = vpop.f32.mrb[4].mxu1 }
 0x5e3   : > { %v974_v54 = vpack.c.bf16 %v968_v53, %v968_v53  ;;  %v2232_v55 = vpop.f32.mrb[5].mxu1  ;;  %v2521_v53 = vld [vmem:[%s3163_s27 + $0x58] sm:$0xff]  }
 0x5e4   : > { %v971_v56 = vpop.f32.mrb[6].mxu1  ;;  %v2523_v55 = vld [vmem:[%s3163_s27 + $0x60] sm:$0xff]  }
 0x5e5   : > { %v2233_v57 = vpop.f32.mrb[7].mxu1  ;;  %2267 = vmatmul.mubr.msk.bf16.vlgmr.msra.gmra.mrb[12].mxu1 %vm867_vm1, %v974_v54  ;;  %v2522_v54 = vld [vmem:[%s3163_s27 + $0x18] sm:$0xff]   ;;  %v2524_v56 = vld [vmem:[%s3163_s27 + $0x20] sm:$0xff]  }
 0x5e6   : > { %2163 = vmatpush3.bf16.msra.mxu1 %v2516_v48  ;;  %v2525_v57 = vld [vmem:[%s3163_s27 + $0x68] sm:$0xff]   ;;  %v1608_v48 = vsub.s32 7, %v3235_v35 }
 0x5e7   : > { %2164 = vmatprep.subr.bf16.mxu1 %v2517_v49  ;;  %v1604_v49 = vrot.slane %v3244_v38, %v1603_v47 }
 0x5ea   : > { %2165 = vmatpush3.bf16.msra.mxu1 %v2518_v50 }
 0x5eb   : > { %2166 = vmatprep.subr.bf16.mxu1 %v2519_v51  ;;  %v1609_v51 = vrot.slane %v3244_v38, %v1608_v48 }
 0x5ee   : > { %2167 = vmatpush3.bf16.msra.mxu1 %v2520_v52 }
 0x5ef   : > { %2168 = vmatprep.subr.bf16.mxu1 %v2521_v53 }
 0x5f2   : > { %2169 = vmatpush3.bf16.msra.mxu1 %v2522_v54  ;;  %v2547_v54 = vld [vmem:[%s3552_s28] sm:$0xff] (!%p2112_p7)  }
 0x5f3   : > { %2170 = vmatprep.subr.bf16.mxu1 %v2523_v55  ;;  %v2829_v55 = vmov (!%p2112_p7), 0.0  }
 0x5f6   : > { %2171 = vmatpush3.bf16.msra.mxu1 %v2524_v56  ;;  %v2555_v56 = vld [vmem:[#allocation9] sm:$0xff] (!%p2112_p7)  }
 0x5f7   : > { %2172 = vmatprep.subr.bf16.mxu1 %v2525_v57  ;;  %v2550_v57 = vld [vmem:[%s3552_s28 + $0x18] sm:$0xff] (!%p2112_p7)  }
 0x655   : > { %v1082_v58 = vpop.f32.mrb[8].mxu1 }
 0x656   : > { %v1088_v59 = vpack.c.bf16 %v1082_v58, %v1082_v58  ;;  %v2244_v60 = vpop.f32.mrb[9].mxu1  ;;  %v2526_v58 = vld [vmem:[%s3163_s27 + $0x28] sm:$0xff]  }
 0x657   : > { %v1085_v61 = vpop.f32.mrb[10].mxu1  ;;  %2173 = vmatpush3.bf16.msra.mxu1 %v2526_v58  ;;  %v2528_v60 = vld [vmem:[%s3163_s27 + $0x30] sm:$0xff]   ;;  %v2556_v58 = vld [vmem:[#allocation9 + $0x8] sm:$0xff] (!%p2112_p7)  }
 0x658   : > { %v2245_v62 = vpop.f32.mrb[11].mxu1  ;;  %2255 = vmatmul.mubr.msk.bf16.vlgmr.msra.gmra.mrb[12].mxu0 %vm867_vm1, %v1088_v59  ;;  %v2527_v59 = vld [vmem:[%s3163_s27 + $0x70] sm:$0xff]   ;;  %v2529_v61 = vld [vmem:[%s3163_s27 + $0x78] sm:$0xff]  }
 0x659   : > { %1388 = vmatprep.mubr.bf16.mxu0 %v2825_v16  ;;  %1357 = vmatpush1.bf16.msra.mxu0 %v2491_v10  ;;  %v2530_v62 = vld [vmem:[%s3163_s27 + $0x38] sm:$0xff]  }
 0x65a   : > { %1358 = vmatprep.subr.bf16.mxu0 %v2496_v12  ;;  %2174 = vmatprep.subr.bf16.mxu1 %v2527_v59  ;;  %v2551_v59 = vld [vmem:[%s3552_s28 + $0x20] sm:$0xff] (!%p2112_p7)  }
 0x65b   : > { %2175 = vmatpush3.bf16.msra.mxu1 %v2528_v60  ;;  %v2557_v60 = vld [vmem:[#allocation9 + $0x10] sm:$0xff] (!%p2112_p7)  }
 0x65c   : > { %2176 = vmatprep.subr.bf16.mxu1 %v2529_v61  ;;  %v2552_v61 = vld [vmem:[%s3552_s28 + $0x28] sm:$0xff] (!%p2112_p7)  }
 0x65d   : > { %1359 = vmatpush1.bf16.msra.mxu0 %v2494_v13 }
 0x65e   : > { %1360 = vmatprep.subr.bf16.mxu0 %v2499_v14 }
 0x65f   : > { %2177 = vmatpush3.bf16.msra.mxu1 %v2530_v62  ;;  %v2558_v62 = vld [vmem:[#allocation9 + $0x18] sm:$0xff] (!%p2112_p7)  }
 0x660   : > { %2290 = vmatprep.subr.bf16.mxu1 (!%p2112_p7), %v2829_v55 }
 0x661   : > { %1361 = vmatpush1.bf16.msra.mxu0 %v2497_v15 }
 0x662   : > { %1362 = vmatprep.subr.bf16.mxu0 %v2502_v20 }
 0x665   : > { %1363 = vmatpush1.bf16.msra.mxu0 %v2500_v21 }
 0x666   : > { %1364 = vmatprep.subr.bf16.mxu0 %v2505_v22 }
 0x669   : > { %1365 = vmatpush1.bf16.msra.mxu0 %v2503_v23 }
 0x66a   : > { %1366 = vmatprep.subr.bf16.mxu0 %v2508_v24 }
 0x66d   : > { %1367 = vmatpush1.bf16.msra.mxu0 %v2506_v25  ;;  %v1451_v25 = vsub.s32 5, %v3235_v35 }
 0x66e   : > { %1368 = vmatprep.subr.bf16.mxu0 %v2511_v26 }
 0x671   : > { %1369 = vmatpush1.bf16.msra.mxu0 %v2509_v27  ;;  %v1452_v27 = vrot.slane %v3244_v38, %v1451_v25 }
 0x672   : > { %1370 = vmatprep.subr.bf16.mxu0 %v2514_v28 }
 0x675   : > { %1371 = vmatpush1.bf16.msra.mxu0 %v2512_v29 }
 0x676   : > { %2270 = vmatprep.subr.bf16.mxu0 (!%p2112_p7), %v2829_v55 }
 0x6b8   : > { %v1217_v33 = vpop.f32.mrb[12].mxu1 }
 0x6b9   : > { %v2268_v63 = vpop.f32.mrb[13].mxu1 }
 0x6ba   : > { %v1220_v0 = vpop.f32.mrb[14].mxu1 }
 0x6bb   : > { %v2269_v1 = vpop.f32.mrb[15].mxu1 }
 0x72b   : > { %v1150_v4 = vpop.f32.mrb[12].mxu0 }
 0x72c   : > { %v1218_v5 = vadd.f32 %v1217_v33, %v1150_v4  ;;  %v2256_v6 = vpop.f32.mrb[13].mxu0  ;;  %v1270_v33 = vsub.s32 4, %v3235_v35  ;;  %v2548_v35 = vld [vmem:[%s3552_s28 + $0x8] sm:$0xff] (!%p2112_p7)  }
 0x72d   : > { %v1153_v7 = vpop.f32.mrb[14].mxu0 }
 0x72e   : > { %v1227_v8 = vadd.f32 %v1226_v3, %v1218_v5  ;;  %v2257_v9 = vpop.f32.mrb[15].mxu0  ;;  %v1271_v63 = vrot.slane %v3244_v38, %v1270_v33  ;;  %v1275_v0 = vrot.slane %v3241_v37, %v1270_v33  ;;  %v2549_v38 = vld [vmem:[%s3552_s28 + $0x10] sm:$0xff] (!%p2112_p7)  }
 0x72f   : > { %v2553_v33 = vld [vmem:[%s3552_s28 + $0x30] sm:$0xff] (!%p2112_p7)  }
 0x730   : > { %v1228_v16 = vadd.f32 %v1227_v8, %v3222_v31 }
 0x732   : > { %1229 = vadd.xlane.f32.xlu1 %v1228_v16 }
 0x7bf   : > { %v1230_v31 = vpop.xlane.xlu1 %1229 }
 0x7c0   : > { %v1232_v17 = vmul.f32 0.0078125, %v1230_v31 }
 0x7c2   : > { %v1233_v18 = vsub.f32 %v1228_v16, %v1232_v17 }
 0x7c4   : > { %v1234_v19 = vmul.f32 %v1233_v18, %v1233_v18 }
 0x7c6   : > { %1235 = vadd.xlane.f32.xlu0 %v1234_v19 }
 0x853   : > { %v1236_v30 = vpop.xlane.xlu0 %1235 }
 0x854   : > { %v1237_v32 = vmul.f32 0.0078125, %v1236_v30 }
 0x856   : > { %v1238_v34 = vadd.f32 1e-12, %v1237_v32 }
 0x858   : > { %2539 = vrsqrt.f32 %v1238_v34 }
 0x862   : > { %v2540_v41 = vpop.eup %2539 }
 0x863   : > { %v1240_v42 = vmul.f32 %v2540_v41, %v1233_v18 }
 0x865   : > { %v1245_v44 = vmul.f32 %v1244_v40, %v1240_v42 }
 0x867   : > { %v3343_v45 = vadd.f32 %v1249_v43, %v1245_v44 }
 0x869   : > { %v1251_v46 = vpack.c.bf16 %v3343_v45, %v3343_v45 }
 0x86b   : > { %1389 = vmatmul.mubr.bf16.vlgmr.msra.gmra.mrb[16].mxu0 %v1251_v46 }
 0x86c   : > { %2271 = vmatpush3.bf16.msra.mxu0 (!%p2112_p7), %v2547_v54  ;;  %2286 = vmatprep.mubr.msk.bf16.mxu0 (!%p2112_p7), %vm2830_vm4, %v2829_v55 }
 0x86d   : > { %2272 = vmatprep.subr.bf16.mxu0 (!%p2112_p7), %v2829_v55 }
 0x870   : > { %2273 = vmatpush3.bf16.msra.mxu0 (!%p2112_p7), %v2548_v35 }
 0x871   : > { %2274 = vmatprep.subr.bf16.mxu0 (!%p2112_p7), %v2829_v55 }
 0x874   : > { %2275 = vmatpush3.bf16.msra.mxu0 (!%p2112_p7), %v2549_v38 }
 0x875   : > { %2276 = vmatprep.subr.bf16.mxu0 (!%p2112_p7), %v2829_v55 }
 0x878   : > { %2277 = vmatpush3.bf16.msra.mxu0 (!%p2112_p7), %v2550_v57 }
 0x879   : > { %2278 = vmatprep.subr.bf16.mxu0 (!%p2112_p7), %v2829_v55 }
 0x87c   : > { %2279 = vmatpush3.bf16.msra.mxu0 (!%p2112_p7), %v2551_v59 }
 0x87d   : > { %2280 = vmatprep.subr.bf16.mxu0 (!%p2112_p7), %v2829_v55 }
 0x880   : > { %2281 = vmatpush3.bf16.msra.mxu0 (!%p2112_p7), %v2552_v61 }
 0x881   : > { %2282 = vmatprep.subr.bf16.mxu0 (!%p2112_p7), %v2829_v55 }
 0x884   : > { %2283 = vmatpush3.bf16.msra.mxu0 (!%p2112_p7), %v2553_v33 }
 0x885   : > { %2284 = vmatprep.subr.bf16.mxu0 (!%p2112_p7), %v2829_v55 }
 0x93e   : > { %v1390_v1 = vpop.f32.mrb[16].mxu0 }
 0x93f   : > { %v1391_v2 = vadd.f32 %v1390_v1, %v1271_v63  ;;  %v1392_v3 = vpop.f32.mrb[17].mxu0  ;;  %v2554_v63 = vld [vmem:[%s3552_s28 + $0x38] sm:$0xff] (!%p2112_p7)   ;;  %v2559_v1 = vld [vmem:[#allocation9 + $0x20] sm:$0xff] (!%p2112_p7)  }
 0x940   : > { %v1393_v4 = vadd.f32 %v1392_v3, %v1275_v0  ;;  %v1394_v5 = vpop.f32.mrb[18].mxu0  ;;  %2285 = vmatpush3.bf16.msra.mxu0 (!%p2112_p7), %v2554_v63  ;;  %v2561_v3 = vld [vmem:[#allocation9 + $0x30] sm:$0xff] (!%p2112_p7)  }
 0x941   : > { %v1397_v6 = vmul.f32 %v1391_v2, %v1391_v2  ;;  %v1395_v7 = vpop.f32.mrb[19].mxu0  ;;  %v1633_v5 = vld [vmem:[%s3553_s25 + $0x2] sm:$0x1] (!%p2112_p7) }
 0x942   : > { %v1398_v8 = vmul.f32 %v1393_v4, %v1393_v4 }
 0x943   : > { %v1399_v9 = vmul.f32 %v1397_v6, %v1391_v2 }
 0x944   : > { %v1400_v16 = vmul.f32 %v1398_v8, %v1393_v4 }
 0x945   : > { %v1401_v10 = vmul.f32 0.044715, %v1399_v9 }
 0x946   : > { %v1402_v11 = vmul.f32 0.044715, %v1400_v16 }
 0x947   : > { %v1403_v12 = vadd.f32 %v1401_v10, %v1391_v2 }
 0x948   : > { %v1404_v13 = vadd.f32 %v1402_v11, %v1393_v4 }
 0x949   : > { %v1405_v14 = vmul.f32 0.7978846, %v1403_v12  ;;  %v1740_v12 = vld [vmem:[%s3553_s25 + $0x3] sm:$0x1] (!%p2112_p7) }
 0x94a   : > { %v1406_v15 = vmul.f32 0.7978846, %v1404_v13 }
 0x94b   : > { %2541 = vtanh.f32 %v1405_v14 }
 0x94c   : > { %2543 = vtanh.f32 %v1406_v15 }
 0x955   : > { %v2542_v31 = vpop.eup %2541 }
 0x956   : > { %v2544_v37 = vpop.eup %2543  ;;  %v1409_v17 = vadd.f32 1.0, %v2542_v31 }
 0x957   : > { %v1410_v18 = vadd.f32 1.0, %v2544_v37 }
 0x958   : > { %v1411_v19 = vmul.f32 0.5, %v1409_v17 }
 0x959   : > { %v1412_v20 = vmul.f32 0.5, %v1410_v18 }
 0x95a   : > { %v1413_v21 = vmul.f32 %v1411_v19, %v1391_v2  ;;  %v2560_v2 = vld [vmem:[#allocation9 + $0x28] sm:$0xff] (!%p2112_p7)  }
 0x95b   : > { %v1414_v22 = vmul.f32 %v1412_v20, %v1393_v4  ;;  %v2562_v4 = vld [vmem:[#allocation9 + $0x38] sm:$0xff] (!%p2112_p7)  }
 0x95c   : > { %v1415_v24 = vpack.c.bf16 %v1413_v21, %v1413_v21 }
 0x95d   : > { %v1416_v23 = vpack.c.bf16 %v1414_v22, %v1414_v22 }
 0x95f   : > { %1581 = vmatprep.mubr.bf16.mxu1 %v1416_v23 }
 0x960   : > { %1582 = vmatmul.mubr.bf16.vlgmr.msra.gmra.mrb[16].mxu1 %v1415_v24 }
 0x961   : > { %2306 = vmatprep.mubr.msk.bf16.mxu1 (!%p2112_p7), %vm2830_vm4, %v2829_v55  ;;  %2291 = vmatpush3.bf16.msra.mxu1 (!%p2112_p7), %v2555_v56 }
 0x962   : > { %2292 = vmatprep.subr.bf16.mxu1 (!%p2112_p7), %v2829_v55 }
 0x965   : > { %2293 = vmatpush3.bf16.msra.mxu1 (!%p2112_p7), %v2556_v58 }
 0x966   : > { %2294 = vmatprep.subr.bf16.mxu1 (!%p2112_p7), %v2829_v55 }
 0x969   : > { %2295 = vmatpush3.bf16.msra.mxu1 (!%p2112_p7), %v2557_v60 }
 0x96a   : > { %2296 = vmatprep.subr.bf16.mxu1 (!%p2112_p7), %v2829_v55 }
 0x96d   : > { %2297 = vmatpush3.bf16.msra.mxu1 (!%p2112_p7), %v2558_v62 }
 0x96e   : > { %2298 = vmatprep.subr.bf16.mxu1 (!%p2112_p7), %v2829_v55 }
 0x971   : > { %2299 = vmatpush3.bf16.msra.mxu1 (!%p2112_p7), %v2559_v1 }
 0x972   : > { %2300 = vmatprep.subr.bf16.mxu1 (!%p2112_p7), %v2829_v55 }
 0x975   : > { %2301 = vmatpush3.bf16.msra.mxu1 (!%p2112_p7), %v2560_v2 }
 0x976   : > { %2302 = vmatprep.subr.bf16.mxu1 (!%p2112_p7), %v2829_v55 }
 0x979   : > { %2303 = vmatpush3.bf16.msra.mxu1 (!%p2112_p7), %v2561_v3 }
 0x97a   : > { %2304 = vmatprep.subr.bf16.mxu1 (!%p2112_p7), %v2829_v55 }
 0x97d   : > { %2305 = vmatpush3.bf16.msra.mxu1 (!%p2112_p7), %v2562_v4 }
 0xa33   : > { %v2178_v26 = vpop.f32.mrb[16].mxu1 }
 0xa34   : > { %v2179_v28 = vpop.f32.mrb[17].mxu1 }
 0xa35   : > { %v2180_v29 = vadd.f32 %v2179_v28, %v2178_v26  ;;  %v2181_v30 = vpop.f32.mrb[18].mxu1 }
 0xa36   : > { %v2182_v32 = vpop.f32.mrb[19].mxu1 }
 0xa37   : > { %v1584_v34 = vadd.f32 %v2180_v29, %v1452_v27 }
 0xa39   : > { %v1589_v36 = vadd.f32 %v1584_v34, %v3343_v45 }
 0xa3b   : > { %1590 = vadd.xlane.f32.xlu0 %v1589_v36 }
 0xac8   : > { %v1591_v39 = vpop.xlane.xlu0 %1590 }
 0xac9   : > { %v1592_v40 = vmul.f32 0.0078125, %v1591_v39 }
 0xacb   : > { %v1593_v41 = vsub.f32 %v1589_v36, %v1592_v40 }
 0xacd   : > { %v1594_v42 = vmul.f32 %v1593_v41, %v1593_v41 }
 0xacf   : > { %1595 = vadd.xlane.f32.xlu0 %v1594_v42 }
 0xb5c   : > { %v1596_v43 = vpop.xlane.xlu0 %1595 }
 0xb5d   : > { %v1597_v44 = vmul.f32 0.0078125, %v1596_v43 }
 0xb5f   : > { %v1598_v46 = vadd.f32 1e-12, %v1597_v44 }
 0xb61   : > { %2545 = vrsqrt.f32 %v1598_v46 }
 0xb6b   : > { %v2546_v50 = vpop.eup %2545 }
 0xb6c   : > { %v1600_v45 = vmul.f32 %v2546_v50, %v1593_v41  ;;  %1615 = sbr.rel (%p2112_p7) target bundleno = 3374 (0xd2e), region = 84 }
 0xb6e   : > { %v1605_v52 = vmul.f32 %v1604_v49, %v1600_v45 }
 0xb70   : > { %v1610_v53 = vadd.f32 %v1609_v51, %v1605_v52 }
 0xb72   : > { %1611 = vst [vmem:[#allocation2] sm:$0xff] %v1610_v53  ;;  %v1616_v0 = vpack.c.bf16 (!%p2112_p7), %v1610_v53, %v1610_v53 }
 0xb74   : > { %2287 = vmatmul.mubr.bf16.vlgmr.msra.gmra.mrb[0].mxu0 %v1616_v0 }
 0xc47   : > { %v1716_v6 = vpop.f32.mrb[0].mxu0 }
 0xc48   : > { %v1717_v7 = vadd.f32 %v1716_v6, %v1633_v5  ;;  %v2288_v8 = vpop.f32.mrb[1].mxu0 }
 0xc49   : > { %v1719_v9 = vpop.f32.mrb[2].mxu0 }
 0xc4a   : > { %2563 = vtanh.f32 %v1717_v7  ;;  %v2289_v16 = vpop.f32.mrb[3].mxu0 }
 0xc54   : > { %v2564_v10 = vpop.eup %2563 }
 0xc55   : > { %v1723_v11 = vpack.c.bf16 %v2564_v10, %v2564_v10 }
 0xc57   : > { %2307 = vmatmul.mubr.bf16.vlgmr.msra.gmra.mrb[0].mxu1 %v1723_v11 }
 0xd2a   : > { %v1823_v13 = vpop.f32.mrb[0].mxu1 }
 0xd2b   : > { %v1824_v14 = vadd.f32 %v1823_v13, %v1740_v12  ;;  %v2308_v15 = vpop.f32.mrb[1].mxu1 }
 0xd2c   : > { %v1826_v31 = vpop.f32.mrb[2].mxu1 }
 0xd2d   : > { %1829 = vst [vmem:[%s3196_s9] sm:$0x1] %v1824_v14  ;;  %v2309_v37 = vpop.f32.mrb[3].mxu1 }
 0xd2e PF: > { %s2129_s18 = sshll.u32 %s2801_s20, 4  ;;  %s3554_s12 = sld [smem:[#allocation37_spill]] }
 0xd2f   : > { %s1843_s22 = sshll.u32 %s3196_s9, 4  ;;  %s3555_s27 = sand.u32 1, %s2777_s14   ;;  %s1844_s22 = int_to_ptr.vmem [resolvable:$true] %s1843_s22 }
 0xd30   : > { %s1831_s15 = scalar_lea.sflag [#allocation5], %s3555_s27  ;;  %s2683_s0 = scalar_lea.vmem %s1844_s22, 16 }
 0xd31   : > { %p2684_p0 = scmp.ne.s32.totalorder %s1844_s22, %s2683_s0  ;;  %p3556_p10 = scmp.ne.s32.totalorder %s3532_s16, 0 }
 0xd32   : > { %s2831_s19 = smov [#allocation11]  }
 0xd33   : > { %p2685_p13 = pnand %p2684_p0, %p3556_p10  ;;  %s2687_s21 = sshll.u32 %s2831_s19, 4  ;;  %s2688_s21 = int_to_ptr.vmem [resolvable:$false] %s2687_s21 }
 0xd34   : > { %s3409_s3 = scalar_lea.hbm %s3554_s12, %s2129_s18  ;;  %s2689_s30 = scalar_lea.vmem %s2688_s21, 32 }
 0xd35   : > { %p2686_p11 = pneg %p2685_p13  ;;  %p2690_p4 = scmp.lt.s32.totalorder %s1844_s22, %s2688_s21 }
 0xd36   : > { %p2691_p5 = scmp.lt.s32.totalorder %s2689_s30, %s2683_s0 }
 0xd38   : > { %p2692_p9 = por %p2691_p5, %p2690_p4 }
 0xd3a   : > { %p2693_p3 = pnand %p2692_p9, %p2686_p11 }
 0xd3c   : > { %2696 = shalt.err (!%p2693_p3)
}
 0xd3d   : > { %s2697_s9 = scalar_lea.hbm %s3409_s3, 16  ;;  %s2701_s1 = scalar_lea.hbm %s3554_s12, 32 }
 0xd3e   : > { %p2698_p2 = scmp.ne.s32.totalorder %s3409_s3, %s2697_s9  ;;  %p2702_p12 = scmp.lt.u32.totalorder %s3409_s3, %s3554_s12 }
 0xd3f   : > { %p2703_p1 = scmp.lt.u32.totalorder %s2701_s1, %s2697_s9  ;;  %p2705_p0 = scmp.lt.u32.totalorder %s2697_s9, %s3409_s3 }
 0xd40   : > { %p2699_p6 = pnand %p2698_p2, %p3556_p10 }
 0xd41   : > { %p2704_p7 = por %p2703_p1, %p2702_p12 }
 0xd42   : > { %p2700_p8 = pneg %p2699_p6 }
 0xd43   : > { %p2706_p13 = por %p2705_p0, %p2704_p7 }
 0xd45   : > { %p2707_p11 = pnand %p2706_p13, %p2700_p8 }
 0xd47   : > { %2710 = shalt.err (!%p2707_p11)
}
 0xd48   : > { %2324 = dma.vmem_to_hbm [thread:$0]  (%p3556_p10), %s1844_s22, 16, %s3409_s3, %s1831_s15  }
 0xd49 PF: > { %s3557_s23 = sld [smem:[#allocation21_spill]]  ;;  %s3558_s11 = sld [smem:[#allocation16_spill]] }
 0xd4a   : > { %s3559_s5 = sld [smem:[#allocation26_spill]] }
 0xd4f   : > { %p2347_p4 = scmp.ge.s32.totalorder %s3557_s23, 2  ;;  %s1855_s4 = sand.u32 1, %s3558_s11  }
 0xd50   : > { %p3560_p5 = scmp.ne.s32.totalorder %s3559_s5, 0  ;;  %s1856_s26 = scalar_lea.sflag [#allocation5], %s1855_s4 }
 0xd52   : > { %p2341_p9 = pnand %p2347_p4, %p3560_p5 }
 0xd54   : > { %2768 = dma.done.wait (!%p2341_p9), %s1856_s26, 16  }
 0xd55   : > { %2770 = vsyncadd (!%p2341_p9), %s1856_s26, 4294967280  ;;  %s30_s23 = sadd.s32 1, %s3557_s23   ;;  %s3561_s10 = sld [smem:[#allocation17_spill]] }
 0xd56   : > { %p27_p3 = scmp.ge.s32.totalorder %s30_s23, 6   ;;  %s3562_s15 = sld [smem:[#allocation25_spill]] }
 0xd57   : > { %s3563_s25 = sld [smem:[#allocation18_spill]]  ;;  %s3564_s18 = sld [smem:[#allocation24_spill]] }
 0xd58   : > { %s3565_s19 = sld [smem:[#allocation19_spill]]  ;;  %s3566_s20 = sld [smem:[#allocation20_spill]] }
 0xd59   : > { %s3567_s21 = sld [smem:[#allocation22_spill]]  ;;  %s3568_s22 = sld [smem:[#allocation23_spill]] }
 0xd5a   : > { %s3569_s13 = smov %s2777_s14  ;;  %s3571_s16 = smov %s2789_s17 }
 0xd5b   : > { %s3570_s14 = smov %s3561_s10  ;;  %29 = sbr.rel (!%p27_p3) target bundleno = 24 (0x18), region = 153 }
 0xd5d   : > { %s3572_s17 = smov %s3563_s25 }
 0xd62   :  { %1860 = vsyncpa [#allocation4], 1 }
 0xd63   :  { %1862 = vsyncpa [#allocation4 + $0x1], 1 }
 0xd64   :  { %1863 = vsyncpa [#allocation7], 1 }
 0xd65   :  { %1865 = vsyncpa [#allocation7 + $0x1], 1 }
 0xd66   :  { %1866 = vsyncpa [#allocation10], 1 }
 0xd67   :  { %1867 = vsyncpa [#allocation5], 1 }
 0xd68   :  { %1869 = vsyncpa [#allocation5 + $0x1], 1 }

</bundles_post_ra>
